<compile_context>
chip_gen: v6e
topology: v6e:2x2x1
jax: 0.10.0
libtpu: 0.0.40
codegen_flags: <defaults>
</compile_context>

<pallas_src>
import functools

import jax
import jax.numpy as jnp
from jax import lax
from jax.experimental import pallas as pl
from jax.experimental.pallas import tpu as pltpu


def _round_up(x, m):
    return ((x + m - 1) // m) * m


def _choose_row_strip(ho, wo, cout_pad, out_bytes, k_pad, cd_bytes,
                      budget_bytes=8 << 20):
    """Largest divisor of `ho` whose per-step working set fits the budget."""
    for th in range(ho, 0, -1):
        if ho % th:
            continue
        strip = 2 * th * wo * cout_pad * out_bytes   # double-buffered output strip
        patch = th * wo * k_pad * cd_bytes           # register/VMEM patch matrix
        acc32 = th * wo * cout_pad * 4               # f32 accumulator
        if strip + patch + acc32 <= budget_bytes:
            return th
    return 1


def cnn_block_kernel(x_ref, w_ref, shift_ref, o_ref, *,
                     th, wo, kh_sz, kw_sz, cin, k, k_pad,
                     negative_slope, apply_act):
    """One (batch-element, row-strip) grid step.

    x_ref:     (1, Hp, Wp, Cin)       spatially padded input (compute dtype),
                                      VMEM-resident across the strip axis
    w_ref:     (K_pad, Cout_pad)      BN-scale-folded im2col weights (compute dtype)
    shift_ref: (1, Cout_pad)          f32 BN shift (or conv bias), zero-padded
    o_ref:     (1, TH, Wo, Cout_pad)  lane-dense output strip
    """
    cout_pad = o_ref.shape[-1]
    row0 = pl.multiple_of(pl.program_id(1) * th, th)

    # Build the im2col patch matrix in registers: tap (kh, kw) contributes Cin
    # columns; a zero tap pads K up to K_pad (matching weight rows are zero).
    taps = []
    for kh in range(kh_sz):
        rows = x_ref[0, pl.ds(row0 + kh, th), :, :]          # (TH, Wp, Cin)
        for kw in range(kw_sz):
            taps.append(rows[:, kw:kw + wo, :])              # (TH, Wo, Cin)
    if k_pad > k:
        taps.append(jnp.zeros((th, wo, k_pad - k), x_ref.dtype))
    pm = jnp.concatenate(taps, axis=-1).reshape(th * wo, k_pad)

    # Single MXU contraction: (TH*Wo, K_pad) @ (K_pad, Cout_pad), f32 accumulation.
    acc = jnp.dot(pm, w_ref[...], preferred_element_type=jnp.float32)

    # f32 epilogue: folded-BN shift (or conv bias) and LeakyReLU(0.1).
    y = acc + shift_ref[0]
    if apply_act:
        y = jnp.where(y > 0, y, negative_slope * y)
    o_ref[0] = y.reshape(th, wo, cout_pad).astype(o_ref.dtype)


def cnn_block_forward_nhwc(x_nhwc, w_oihw, conv_bias, gamma, beta,
                           running_mean, running_var, *,
                           stride=1, padding=1, eps=1e-5, bn_act=True,
                           compute_dtype=jnp.bfloat16):
    """JAX/Pallas equivalent of CNNBlock.forward (eval-mode BN), NHWC activations."""
    assert stride == 1  # TODO(synk): general stride support
    n, h, w, cin = x_nhwc.shape
    cout, cin_w, kh, kw = w_oihw.shape
    assert cin_w == cin
    out_dtype = x_nhwc.dtype

    ho = h + 2 * padding - kh + 1
    wo = w + 2 * padding - kw + 1

    # ---- parameter prep (trace-time, tiny) ----
    w_hwio = jnp.transpose(w_oihw, (2, 3, 1, 0)).astype(jnp.float32)     # HWIO
    if bn_act:
        scale = (gamma / jnp.sqrt(running_var + eps)).astype(jnp.float32)
        shift = (beta - running_mean * scale).astype(jnp.float32)
        neg_slope, apply_act = 0.1, True
    else:
        scale = jnp.ones((cout,), jnp.float32)
        shift = (conv_bias if conv_bias is not None
                 else jnp.zeros((cout,), jnp.float32)).astype(jnp.float32)
        neg_slope, apply_act = 1.0, False
    # Fold the BN scale into the conv weights (conv is linear).
    w_folded = w_hwio * scale[None, None, None, :]

    # im2col weight layout + lane-dense Cout padding + packing-friendly K pad.
    cout_pad = _round_up(max(cout, 128), 128)
    k = kh * kw * cin
    k_mult = 16 if jnp.dtype(compute_dtype).itemsize == 2 else 8
    k_pad = _round_up(k, k_mult)
    w2 = w_folded.reshape(k, cout)                                        # (kh,kw,cin) row-major
    w2 = jnp.pad(w2, ((0, k_pad - k), (0, cout_pad - cout))).astype(compute_dtype)
    shift_p = jnp.pad(shift, (0, cout_pad - cout)).reshape(1, cout_pad)

    # Spatial zero-pad of the activations + cast to the (bf16) matmul dtype.
    # TODO(synk): handle the conv halo inside the kernel (masked edge taps /
    #             overlapping row-strip input blocks) so this padded HBM copy
    #             disappears and huge images don't need the full image in VMEM.
    xp = jnp.pad(x_nhwc,
                 ((0, 0), (padding, padding), (padding, padding), (0, 0))
                 ).astype(compute_dtype)
    hp, wp = xp.shape[1], xp.shape[2]

    th = _choose_row_strip(ho, wo, cout_pad, jnp.dtype(out_dtype).itemsize,
                           k_pad, jnp.dtype(compute_dtype).itemsize)
    n_strips = ho // th

    kernel = functools.partial(
        cnn_block_kernel, th=th, wo=wo, kh_sz=kh, kw_sz=kw, cin=cin,
        k=k, k_pad=k_pad, negative_slope=neg_slope, apply_act=apply_act)

    out_padded = pl.pallas_call(
        kernel,
        out_shape=jax.ShapeDtypeStruct((n, ho, wo, cout_pad), out_dtype),
        grid_spec=pltpu.PrefetchScalarGridSpec(
            num_scalar_prefetch=0,
            grid=(n, n_strips),
            in_specs=[
                # Full padded image per batch element; same block index across
                # the strip axis so it stays VMEM-resident while output strips
                # stream out.
                pl.BlockSpec((1, hp, wp, cin), lambda b, s: (b, 0, 0, 0)),
                pl.BlockSpec((k_pad, cout_pad), lambda b, s: (0, 0)),
                pl.BlockSpec((1, cout_pad), lambda b, s: (0, 0)),
            ],
            out_specs=pl.BlockSpec((1, th, wo, cout_pad),
                                   lambda b, s: (b, s, 0, 0)),
        ),
        compiler_params=pltpu.CompilerParams(
            dimension_semantics=("parallel", "parallel"),
            vmem_limit_bytes=48 * 1024 * 1024),
    )(xp, w2, shift_p)

    # Drop the Cout padding lanes (no-op when cout is already a 128 multiple).
    return out_padded[..., :cout]


def cnn_block_forward(x_nchw, w_oihw, conv_bias, gamma, beta,
                      running_mean, running_var, **kwargs):
    """NCHW-facing wrapper (PyTorch parity).

    NOTE: in a full network keep activations NHWC end-to-end and call
    cnn_block_forward_nhwc directly; these two transposes exist only to match
    the PyTorch NCHW interface and are extra HBM round trips.
    """
    x_nhwc = jnp.transpose(x_nchw, (0, 2, 3, 1))
    out_nhwc = cnn_block_forward_nhwc(x_nhwc, w_oihw, conv_bias, gamma, beta,
                                      running_mean, running_var, **kwargs)
    return jnp.transpose(out_nhwc, (0, 3, 1, 2))


def reference_forward(x, w, bias, gamma, beta, rm, rv, eps=1e-5, bn_act=True):
    """Pure-JAX reference (conv [+ eval-BN + LeakyReLU]) for verification."""
    y = lax.conv_general_dilated(
        x, w, window_strides=(1, 1), padding=((1, 1), (1, 1)),
        dimension_numbers=('NCHW', 'OIHW', 'NCHW'))
    if bn_act:
        scale = gamma / jnp.sqrt(rv + eps)
        shift = beta - rm * scale
        y = y * scale[None, :, None, None] + shift[None, :, None, None]
        return jnp.where(y > 0, y, 0.1 * y)
    return y + bias[None, :, None, None]


if __name__ == "__main__":
    # Small shapes: batch=2, in_channels=4, out_channels=8, spatial=16,
    # Conv2d(kernel_size=3, stride=1, padding=1).
    key = jax.random.PRNGKey(0)
    kx, kw_, kg, kb, km, kv, kbias = jax.random.split(key, 7)

    N, Cin, H, W = 2, 4, 16, 16
    Cout, KH, KW = 8, 3, 3

    x = jax.random.normal(kx, (N, Cin, H, W), jnp.float32)
    w_oihw = jax.random.normal(kw_, (Cout, Cin, KH, KW), jnp.float32) * 0.1
    conv_bias = jax.random.normal(kbias, (Cout,), jnp.float32) * 0.1
    gamma = 0.5 + jax.random.uniform(kg, (Cout,), jnp.float32)
    beta = jax.random.normal(kb, (Cout,), jnp.float32) * 0.1
    running_mean = jax.random.normal(km, (Cout,), jnp.float32) * 0.1
    running_var = 0.5 + jax.random.uniform(kv, (Cout,), jnp.float32)

    # bn_act=True path: Conv (no bias) -> BN(eval) -> LeakyReLU(0.1).
    out = cnn_block_forward(x, w_oihw, None, gamma, beta,
                            running_mean, running_var,
                            stride=1, padding=1, bn_act=True)
    out = jax.block_until_ready(out)
    ref = reference_forward(x, w_oihw, conv_bias, gamma, beta,
                            running_mean, running_var, bn_act=True)
    assert out.shape == (N, Cout, H, W), out.shape
    # bf16 matmul operands with f32 accumulation vs an f32 reference -> loose tol.
    assert jnp.allclose(out, ref, atol=6e-2, rtol=6e-2), \
        float(jnp.abs(out - ref).max())

    # bn_act=False path: Conv + bias only (no BN, no activation).
    out2 = cnn_block_forward(x, w_oihw, conv_bias, gamma, beta,
                             running_mean, running_var,
                             stride=1, padding=1, bn_act=False)
    out2 = jax.block_until_ready(out2)
    ref2 = reference_forward(x, w_oihw, conv_bias, gamma, beta,
                             running_mean, running_var, bn_act=False)
    assert out2.shape == (N, Cout, H, W), out2.shape
    assert jnp.allclose(out2, ref2, atol=6e-2, rtol=6e-2), \
        float(jnp.abs(out2 - ref2).max())

    print("KERNEL_OK")
</pallas_src>

<mosaic_0001>
module attributes {stable_mosaic.version = 11 : i64} {
  func.func @cnn_block_kernel(%arg0: i32, %arg1: i32, %arg2: memref<1x18x18x4xbf16, #tpu.memory_space<vmem>>, %arg3: memref<48x128xbf16, #tpu.memory_space<vmem>>, %arg4: memref<1x128xf32, #tpu.memory_space<vmem>>, %arg5: memref<1x16x16x128xf32, #tpu.memory_space<vmem>>) attributes {dimension_semantics = [#tpu.dimension_semantics<parallel>, #tpu.dimension_semantics<parallel>], iteration_bounds = array<i64: 2, 1>, scalar_prefetch = 0 : i64, scratch_operands = 0 : i64, tpu.core_type = #tpu.core_type<tc>, window_params = [{transform_indices = @transform_0, window_bounds = array<i64: 1, 18, 18, 4>}, {pipeline_mode = #tpu.pipeline_mode<synchronous>, transform_indices = @transform_1, window_bounds = array<i64: 48, 128>}, {pipeline_mode = #tpu.pipeline_mode<synchronous>, transform_indices = @transform_2, window_bounds = array<i64: 1, 128>}, {transform_indices = @transform_3, window_bounds = array<i64: 1, 16, 16, 128>}]} {
    %c16_i32 = arith.constant 16 : i32
    %0 = arith.muli %arg1, %c16_i32 : i32
    %1 = tpu.assume_multiple %0, 16 : i32
    %c0_i32 = arith.constant 0 : i32
    %2 = arith.addi %1, %c0_i32 : i32
    %c0 = arith.constant 0 : index
    %3 = arith.index_cast %2 : i32 to index
    %c0_0 = arith.constant 0 : index
    %c0_1 = arith.constant 0 : index
    %4 = vector.load %arg2[%c0, %3, %c0_0, %c0_1] : memref<1x18x18x4xbf16, #tpu.memory_space<vmem>>, vector<1x16x18x4xbf16>
    %5 = vector.shape_cast %4 : vector<1x16x18x4xbf16> to vector<16x18x4xbf16>
    %6 = vector.extract_strided_slice %5 {offsets = [0, 0, 0], sizes = [16, 16, 4], strides = [1, 1, 1]} : vector<16x18x4xbf16> to vector<16x16x4xbf16>
    %7 = vector.extract_strided_slice %5 {offsets = [0, 1, 0], sizes = [16, 16, 4], strides = [1, 1, 1]} : vector<16x18x4xbf16> to vector<16x16x4xbf16>
    %8 = vector.extract_strided_slice %5 {offsets = [0, 2, 0], sizes = [16, 16, 4], strides = [1, 1, 1]} : vector<16x18x4xbf16> to vector<16x16x4xbf16>
    %c1_i32 = arith.constant 1 : i32
    %9 = arith.addi %1, %c1_i32 : i32
    %c0_2 = arith.constant 0 : index
    %10 = arith.index_cast %9 : i32 to index
    %c0_3 = arith.constant 0 : index
    %c0_4 = arith.constant 0 : index
    %11 = vector.load %arg2[%c0_2, %10, %c0_3, %c0_4] : memref<1x18x18x4xbf16, #tpu.memory_space<vmem>>, vector<1x16x18x4xbf16>
    %12 = vector.shape_cast %11 : vector<1x16x18x4xbf16> to vector<16x18x4xbf16>
    %13 = vector.extract_strided_slice %12 {offsets = [0, 0, 0], sizes = [16, 16, 4], strides = [1, 1, 1]} : vector<16x18x4xbf16> to vector<16x16x4xbf16>
    %14 = vector.extract_strided_slice %12 {offsets = [0, 1, 0], sizes = [16, 16, 4], strides = [1, 1, 1]} : vector<16x18x4xbf16> to vector<16x16x4xbf16>
    %15 = vector.extract_strided_slice %12 {offsets = [0, 2, 0], sizes = [16, 16, 4], strides = [1, 1, 1]} : vector<16x18x4xbf16> to vector<16x16x4xbf16>
    %c2_i32 = arith.constant 2 : i32
    %16 = arith.addi %1, %c2_i32 : i32
    %c0_5 = arith.constant 0 : index
    %17 = arith.index_cast %16 : i32 to index
    %c0_6 = arith.constant 0 : index
    %c0_7 = arith.constant 0 : index
    %18 = vector.load %arg2[%c0_5, %17, %c0_6, %c0_7] : memref<1x18x18x4xbf16, #tpu.memory_space<vmem>>, vector<1x16x18x4xbf16>
    %19 = vector.shape_cast %18 : vector<1x16x18x4xbf16> to vector<16x18x4xbf16>
    %20 = vector.extract_strided_slice %19 {offsets = [0, 0, 0], sizes = [16, 16, 4], strides = [1, 1, 1]} : vector<16x18x4xbf16> to vector<16x16x4xbf16>
    %21 = vector.extract_strided_slice %19 {offsets = [0, 1, 0], sizes = [16, 16, 4], strides = [1, 1, 1]} : vector<16x18x4xbf16> to vector<16x16x4xbf16>
    %22 = vector.extract_strided_slice %19 {offsets = [0, 2, 0], sizes = [16, 16, 4], strides = [1, 1, 1]} : vector<16x18x4xbf16> to vector<16x16x4xbf16>
    %cst = arith.constant 0.000000e+00 : bf16
    %23 = vector.broadcast %cst : bf16 to vector<16x16x12xbf16>
    %24 = tpu.concatenate %6, %7, %8, %13, %14, %15, %20, %21, %22, %23 in 2 : vector<16x16x4xbf16>, vector<16x16x4xbf16>, vector<16x16x4xbf16>, vector<16x16x4xbf16>, vector<16x16x4xbf16>, vector<16x16x4xbf16>, vector<16x16x4xbf16>, vector<16x16x4xbf16>, vector<16x16x4xbf16>, vector<16x16x12xbf16> -> vector<16x16x48xbf16>
    %25 = vector.shape_cast %24 : vector<16x16x48xbf16> to vector<256x48xbf16>
    %c0_8 = arith.constant 0 : index
    %c0_9 = arith.constant 0 : index
    %26 = vector.load %arg3[%c0_8, %c0_9] : memref<48x128xbf16, #tpu.memory_space<vmem>>, vector<48x128xbf16>
    %cst_10 = arith.constant dense<0.000000e+00> : vector<256x128xf32>
    %27 = tpu.matmul %25, %26, %cst_10 {dimension_numbers = #tpu.dot_dimension_numbers<[1], [0], [0], [1], [0, 0, 1, 1], [], []>} : vector<256x48xbf16>, vector<48x128xbf16>, vector<256x128xf32> -> vector<256x128xf32>
    %c0_11 = arith.constant 0 : index
    %c0_12 = arith.constant 0 : index
    %28 = vector.load %arg4[%c0_11, %c0_12] : memref<1x128xf32, #tpu.memory_space<vmem>>, vector<1x128xf32>
    %29 = vector.shape_cast %28 : vector<1x128xf32> to vector<128xf32>
    %30 = vector.shape_cast %29 : vector<128xf32> to vector<1x128xf32>
    %31 = vector.broadcast %30 : vector<1x128xf32> to vector<256x128xf32>
    %32 = arith.addf %27, %31 : vector<256x128xf32>
    %cst_13 = arith.constant 0.000000e+00 : f32
    %33 = vector.broadcast %cst_13 : f32 to vector<256x128xf32>
    %34 = arith.cmpf ogt, %32, %33 : vector<256x128xf32>
    %cst_14 = arith.constant 1.000000e-01 : f32
    %35 = vector.broadcast %cst_14 : f32 to vector<256x128xf32>
    %36 = arith.mulf %35, %32 : vector<256x128xf32>
    %37 = arith.select %34, %32, %36 : vector<256x128xi1>, vector<256x128xf32>
    %38 = vector.shape_cast %37 : vector<256x128xf32> to vector<16x16x128xf32>
    %c0_15 = arith.constant 0 : index
    %c0_16 = arith.constant 0 : index
    %c0_17 = arith.constant 0 : index
    %c0_18 = arith.constant 0 : index
    %39 = vector.load %arg5[%c0_15, %c0_16, %c0_17, %c0_18] : memref<1x16x16x128xf32, #tpu.memory_space<vmem>>, vector<1x16x16x128xf32>
    %40 = vector.shape_cast %39 : vector<1x16x16x128xf32> to vector<16x16x128xf32>
    %41 = vector.shape_cast %38 : vector<16x16x128xf32> to vector<1x16x16x128xf32>
    tpu.vector_store %arg5[%c0_15, %c0_16, %c0_17, %c0_18], %41 {strides = array<i32>} : memref<1x16x16x128xf32, #tpu.memory_space<vmem>>, vector<1x16x16x128xf32>,
    return
  }
  func.func @transform_0(%arg0: i32, %arg1: i32) -> (i32, i32, i32, i32) {
    %c0_i32 = arith.constant 0 : i32
    %c0_i32_0 = arith.constant 0 : i32
    %c0_i32_1 = arith.constant 0 : i32
    %c0_i32_2 = arith.constant 0 : i32
    return %arg0, %c0_i32, %c0_i32_0, %c0_i32_1 : i32, i32, i32, i32
  }
  func.func @transform_1(%arg0: i32, %arg1: i32) -> (i32, i32) {
    %c0_i32 = arith.constant 0 : i32
    %c0_i32_0 = arith.constant 0 : i32
    %c0_i32_1 = arith.constant 0 : i32
    return %c0_i32, %c0_i32_0 : i32, i32
  }
  func.func @transform_2(%arg0: i32, %arg1: i32) -> (i32, i32) {
    %c0_i32 = arith.constant 0 : i32
    %c0_i32_0 = arith.constant 0 : i32
    %c0_i32_1 = arith.constant 0 : i32
    return %c0_i32, %c0_i32_0 : i32, i32
  }
  func.func @transform_3(%arg0: i32, %arg1: i32) -> (i32, i32, i32, i32) {
    %c0_i32 = arith.constant 0 : i32
    %c0_i32_0 = arith.constant 0 : i32
    %c0_i32_1 = arith.constant 0 : i32
    return %arg0, %arg1, %c0_i32, %c0_i32_0 : i32, i32, i32, i32
  }
}

</mosaic_0001>

<bundles_post_ra>
// kernel: tpu_custom_call.1
= control target key start
LH: loop header
LB: loop body
LE: loop exit
PB: predicated region body
PF: predicated region fallthrough
CT: control target
= control target key end

     0   :  { %8 = vsyncpa [#allocation3], 0  ;;  %s4248_s0 = inlined_call_operand.vmem [shape: bf16[2,18,18,4], index: 0, kind: input, shape index: {}]   ;;  %s4249_s1 = inlined_call_operand.vmem [shape: bf16[48,128], index: 1, kind: input, shape index: {}]   ;;  %s4250_s2 = inlined_call_operand.vmem [shape: f32[1,128], index: 2, kind: input, shape index: {}]   ;;  %s4251_s3 = inlined_call_operand.hbm [shape: f32[2,16,16,128], index: 3, kind: output, shape index: {}]  }
   0x1   :  { %10 = vsyncpa [#allocation3 + $0x1], 0  ;;  %s3010_s12 = smov 0   ;;  %s3012_s13 = smov 0  }
   0x2   :  { %s3014_s14 = smov 0   ;;  %s3016_s15 = smov 0  }
   0x3   :  { %s3018_s16 = smov 0   ;;  %s3020_s17 = smov 0  }
   0x4 LB: > { %s2438_s18 = sadd.s32 4294967295, %s2978_s17   ;;  %s2439_s19 = sadd.s32 4294967294, %s2978_s17   ;;  %s2978_s17 = sphi %s3020_s17, %s16_s17   ;;  %s2974_s16 = sphi %s3018_s16, %s4258_s16   ;;  %s2970_s15 = sphi %s3016_s15, %s4257_s15   ;;  %s2966_s14 = sphi %s3014_s14, %s4256_s14   ;;  %s2962_s13 = sphi %s3012_s13, %s4255_s13   ;;  %s2958_s12 = sphi %s3010_s12, %s4254_s12  }
   0x5   : > { %s28_s20 = sadd.s32 1, %s2974_s16  ;;  %s105_s21 = sadd.s32 1, %s2966_s14 }
   0x6   : > { %p30_p0 = scmp.ge.s32.totalorder %s28_s20, 2  ;;  %p115_p1 = scmp.ne.s32.totalorder %s2966_s14, %s2962_s13 }
   0x7   : > { %p116_p2 = scmp.eq.s32.totalorder %s2438_s18, 1  ;;  %p121_p3 = scmp.ne.s32.totalorder %s2962_s13, %s2958_s12 }
   0x8   : > { %s4260_s20 = smov (%p30_p0, %s28_s20), 0  ;;  %p122_p5 = scmp.eq.s32.totalorder %s2439_s19, 1 }
   0x9   : > { %p3050_p4 = por %p116_p2, %p115_p1  ;;  %s100_s23 = ssub.s32 %s2974_s16, %s4260_s20 }
   0xa   : > { %p2442_p6 = scmp.ge.s32.totalorder %s2978_s17, 1  ;;  %p103_p7 = scmp.eq.s32.totalorder %s100_s23, 0 }
   0xb   : > { %p3057_p8 = por %p122_p5, %p121_p3  ;;  %p154_p9 = scmp.lt.s32.totalorder %s2978_s17, 3 }
   0xc   : > { %s3063_s25 = scalar_select %p103_p7, %s2966_s14, %s105_s21  }
   0xd   : > { %p155_p10 = pnand %p2442_p6, %p154_p9 }
   0xe   : > { %p178_p11 = scmp.lt.s32.totalorder (!%p155_p10), %s2970_s15, 1  ;;  %s2980_s4 = smov (!%p155_p10), 12  }
   0xf   : > { %158 = sbr.rel (%p155_p10) target bundleno = 614 (0x266), region = 32  ;;  %s2981_s5 = smov (!%p155_p10), 8  }
  0x10   : > { %s2982_s6 = smov (!%p155_p10), 4   ;;  %s2983_s7 = smov (!%p155_p10), 16  }
  0x11   : > { %s2984_s8 = smov (!%p155_p10), 20   ;;  %s2985_s9 = smov (!%p155_p10), 24  }
  0x12   : > { %s2986_s10 = smov (!%p155_p10), 28   ;;  %s2987_s11 = smov (!%p155_p10), 32  }
  0x13   : > { %s175_s28 = sand.u32 (!%p155_p10), 1, %s2962_s13   ;;  %s2988_s19 = smov (!%p155_p10), [#allocation2]  }
  0x14   : > { %s179_s26 = scalar_select %p178_p11, %s2970_s15, 1  ;;  %vm694_vm0 = vcmask 1046528   ;;  %vm469_vm1 = vsmask.f32 7424  ;;  %vm1703_vm2 = vcmask 31744   ;;  %vm1736_vm3 = vcmask 64512  }
  0x15   : > { %vm1769_vm4 = vcmask 97280   ;;  %vm1802_vm5 = vcmask 130048   ;;  %vm1835_vm6 = vcmask 162816   ;;  %vm1868_vm7 = vcmask 195584   ;;  %s2906_s21 = sshll.u32 %s2988_s19, 4  ;;  %s2907_s21 = int_to_ptr.vmem [resolvable:$false] %s2906_s21 }
  0x16   : > { %s2726_s27 = smul.u32 216, %s179_s26  ;;  %vm1901_vm8 = vcmask 228352   ;;  %vm1934_vm9 = vcmask 261120   ;;  %vm1967_vm10 = vcmask 293888   ;;  %vm2016_vm11 = vcmask 392192   ;;  %s2908_s23 = scalar_lea.vmem %s2907_s21, 8192 }
  0x18   : > { %s3070_s30 = scalar_lea.vmem %s4248_s0, %s2726_s27 }
  0x19   : > { %v3073_v0 = vld [vmem:[%s3070_s30 + $0x6c] sm:$0xff]   ;;  %v3083_v2 = vld [vmem:[%s3070_s30 + $0x60] sm:$0xff]   ;;  %v2794_v3 = vld [vmem:[%s3070_s30 + $0x68] ss:$0 sps:$4 sm:$0x11]  }
  0x1a   : > { %v3076_v1 = vld [vmem:[%s3070_s30 + $0xc] sm:$0xff]   ;;  %871 = vrot.lane.b32.xlu1 %v3073_v0, %s2980_s4  ;;  %v2795_v4 = vld [vmem:[%s3070_s30] sm:$0xff]   ;;  %v1032_v5 = vshrl.u32 %v3073_v0, 16  ;;  %v719_v6 = vrot.slane %v3083_v2, 1  ;;  %v720_v7 = vrot.slane %v2794_v3, 1  ;;  %v3102_v36 = vld [vmem:[%s3070_s30 + $0x78] sm:$0xff]  }
  0x1b   : > { %855 = vrot.lane.b32.xlu0 %v3076_v1, %s2980_s4  ;;  %v2796_v8 = vld [vmem:[%s3070_s30 + $0x8] ss:$0 sps:$4 sm:$0x11]   ;;  %v2797_v9 = vld [vmem:[%s3070_s30 + $0x6c] sm:$0xff]   ;;  %v695_v10 = vrot.slane %v2795_v4, 1  ;;  %v471_v22 = vshrl.u32 %v2795_v4, 16 }
  0x1c   : > { %v2799_v11 = vld [vmem:[%s3070_s30 + $0xc] sm:$0xff]   ;;  %v721_v12 = vsel %vm694_vm0, %v719_v6, %v720_v7  ;;  %v696_v13 = vrot.slane %v2796_v8, 1  ;;  %v2798_v14 = vld [vmem:[%s3070_s30 + $0x74] ss:$0 sps:$4 sm:$0x11]   ;;  %v722_v15 = vrot.slane %v2797_v9, 1 }
  0x1d   : > { %v698_v16 = vrot.slane %v2799_v11, 1  ;;  %v723_v18 = vrot.slane %v2798_v14, 1  ;;  %v2800_v19 = vld [vmem:[%s3070_s30 + $0x14] ss:$0 sps:$4 sm:$0x11]   ;;  %v483_v20 = vshrl.u32 %v2799_v11, 16 }
  0x1e   : > { %759 = vrot.lane.b32.xlu1 %v721_v12, %s2981_s5  ;;  %v697_v17 = vsel %vm694_vm0, %v695_v10, %v696_v13  ;;  %v485_v21 = vshll.u32 %v2799_v11, 16  ;;  %v473_v23 = vshll.u32 %v2795_v4, 16  ;;  %v699_v25 = vrot.slane %v2800_v19, 1  ;;  %v2803_v44 = vld [vmem:[%s3070_s30 + $0x74] ss:$0 sps:$4 sm:$0x11]  }
  0x1f   : > { %743 = vrot.lane.b32.xlu0 %v697_v17, %s2981_s5  ;;  %v724_v24 = vsel %vm694_vm0, %v722_v15, %v723_v18  ;;  %v490_v26 = vshll.u32 %v2800_v19, 16  ;;  %v478_v27 = vshll.u32 %v2796_v8, 16  ;;  %v579_v30 = vshrl.u32 %v2797_v9, 16  ;;  %v2804_v49 = vld [vmem:[%s3070_s30 + $0x14] ss:$0 sps:$4 sm:$0x11]  }
  0x20   : > { %v487_v28 = vrot.slane %v485_v21, 1  ;;  %v475_v29 = vrot.slane %v473_v23, 1  ;;  %v581_v31 = vshll.u32 %v2797_v9, 16  ;;  %v700_v32 = vsel %vm694_vm0, %v698_v16, %v699_v25  ;;  %v3114_v52 = vld [vmem:[%s3070_s30 + $0x18] sm:$0xff]  }
  0x21   : > { %v492_v33 = vrot.slane %v490_v26, 1  ;;  %v480_v34 = vrot.slane %v478_v27, 1  ;;  %v586_v35 = vshll.u32 %v2798_v14, 16  ;;  %v567_v40 = vshrl.u32 %v3083_v2, 16  ;;  %v3144_v26 = vld [vmem:[%s3070_s30 + $0x78] sm:$0xff]  }
  0x22   : > { %761 = vrot.lane.b32.xlu1 %v724_v24, %s2981_s5  ;;  %v488_v37 = vor.u32 %v487_v28, %v483_v20  ;;  %v476_v38 = vor.u32 %v475_v29, %v471_v22  ;;  %v583_v39 = vrot.slane %v581_v31, 1  ;;  %v569_v42 = vshll.u32 %v3083_v2, 16  ;;  %v2805_v58 = vld [vmem:[%s3070_s30 + $0x80] ss:$0 sps:$4 sm:$0x11]  }
  0x23   : > { %745 = vrot.lane.b32.xlu0 %v700_v32, %s2981_s5  ;;  %v588_v41 = vrot.slane %v586_v35, 1  ;;  %v574_v43 = vshll.u32 %v2794_v3, 16  ;;  %v1034_v48 = vshll.u32 %v3073_v0, 16  ;;  %v1039_v53 = vshll.u32 %v2803_v44, 16  ;;  %v3164_v35 = vld [vmem:[%s3070_s30 + $0x24] sm:$0xff]  }
  0x24   : > { %v493_v45 = vsel %vm469_vm1, %v488_v37, %v492_v33  ;;  %v481_v46 = vsel %vm469_vm1, %v476_v38, %v480_v34  ;;  %v584_v47 = vor.u32 %v583_v39, %v579_v30  ;;  %v571_v50 = vrot.slane %v569_v42, 1  ;;  %v2806_v62 = vld [vmem:[%s3070_s30 + $0x20] ss:$0 sps:$4 sm:$0x11]   ;;  %v3159_v33 = vld [vmem:[%s3070_s30 + $0x84] sm:$0xff]  }
  0x25   : > { %v576_v51 = vrot.slane %v574_v43, 1  ;;  %v1036_v55 = vrot.slane %v1034_v48, 1  ;;  %v938_v56 = vshll.u32 %v3076_v1, 16  ;;  %v943_v57 = vshll.u32 %v2804_v49, 16 }
  0x26   : > { %664 = vrot.lane.b32.xlu1 %v493_v45, %s2982_s6  ;;  %v589_v54 = vsel %vm469_vm1, %v584_v47, %v588_v41  ;;  %v572_v59 = vor.u32 %v571_v50, %v567_v40  ;;  %v936_v60 = vshrl.u32 %v3076_v1, 16  ;;  %v1046_v61 = vshll.u32 %v3102_v36, 16  ;;  %v3156_v32 = vld [vmem:[%s3070_s30 + $0x80] ss:$0 sps:$4 sm:$0x11]   ;;  %v3188_v50 = vld [vmem:[%s3070_s30 + $0x78] sm:$0xff]  }
  0x27   : > { %662 = vrot.lane.b32.xlu0 %v481_v46, %s2982_s6  ;;  %v1041_v63 = vrot.slane %v1039_v53, 1  ;;  %v940_v2 = vrot.slane %v938_v56, 1  ;;  %v945_v4 = vrot.slane %v943_v57, 1  ;;  %v1044_v6 = vshrl.u32 %v3102_v36, 16 }
  0x28   : > { %v577_v3 = vsel %vm469_vm1, %v572_v59, %v576_v51  ;;  %v950_v7 = vshll.u32 %v3114_v52, 16  ;;  %v1037_v8 = vor.u32 %v1036_v55, %v1032_v5  ;;  %v1048_v9 = vrot.slane %v1046_v61, 1  ;;  %v3195_v55 = vld [vmem:[%s3070_s30 + $0x18] sm:$0xff]  }
  0x29   : > { %v1051_v10 = vshll.u32 %v2805_v58, 16  ;;  %v941_v11 = vor.u32 %v940_v2, %v936_v60  ;;  %v948_v12 = vshrl.u32 %v3114_v52, 16  ;;  %v955_v14 = vshll.u32 %v2806_v62, 16 }
  0x2a   : > { %680 = vrot.lane.b32.xlu1 %v589_v54, %s2982_s6  ;;  %v952_v13 = vrot.slane %v950_v7, 1  ;;  %v1042_v15 = vsel %vm469_vm1, %v1037_v8, %v1041_v63  ;;  %v1049_v16 = vor.u32 %v1048_v9, %v1044_v6  ;;  %v1183_v21 = vrot.slane %v3073_v0, 1  ;;  %v3205_v63 = vld [vmem:[%s3070_s30 + $0x20] ss:$0 sps:$4 sm:$0x11]  }
  0x2b   : > { %678 = vrot.lane.b32.xlu0 %v577_v3, %s2982_s6  ;;  %v1053_v17 = vrot.slane %v1051_v10, 1  ;;  %v946_v5 = vsel %vm469_vm1, %v941_v11, %v945_v4  ;;  %v957_v19 = vrot.slane %v955_v14, 1  ;;  %v1184_v22 = vrot.slane %v2803_v44, 1  ;;  %v3178_v44 = vld [vmem:[%s3070_s30 + $0x8c] ss:$0 sps:$4 sm:$0x11]  }
  0x2c   : > { %v953_v18 = vor.u32 %v952_v13, %v948_v12  ;;  %v1159_v24 = vrot.slane %v3076_v1, 1  ;;  %v1160_v25 = vrot.slane %v2804_v49, 1  ;;  %v1186_v28 = vrot.slane %v3102_v36, 1  ;;  %v3153_v1 = vld [vmem:[%s3070_s30 + $0x18] sm:$0xff]  }
  0x2d   : > { %v1054_v20 = vsel %vm469_vm1, %v1049_v16, %v1053_v17  ;;  %v1185_v27 = vsel %vm694_vm0, %v1183_v21, %v1184_v22  ;;  %v1187_v0 = vrot.slane %v2805_v58, 1  ;;  %v1162_v30 = vrot.slane %v3114_v52, 1  ;;  %v3185_v49 = vld [vmem:[%s3070_s30 + $0x2c] ss:$0 sps:$4 sm:$0x11]  }
  0x2e   : > { %873 = vrot.lane.b32.xlu1 %v3102_v36, %s2980_s4  ;;  %v958_v23 = vsel %vm469_vm1, %v953_v18, %v957_v19  ;;  %v1161_v29 = vsel %vm694_vm0, %v1159_v24, %v1160_v25  ;;  %v1163_v31 = vrot.slane %v2806_v62, 1  ;;  %v1498_v34 = vshll.u32 %v3144_v26, 16  ;;  %v3167_v36 = vld [vmem:[%s3070_s30 + $0x20] ss:$0 sps:$4 sm:$0x11]   ;;  %v3225_v18 = vld [vmem:[%s3070_s30 + $0x84] sm:$0xff]  }
  0x2f   : > { %857 = vrot.lane.b32.xlu0 %v3114_v52, %s2980_s4  ;;  %v1188_v37 = vsel %vm694_vm0, %v1186_v28, %v1187_v0  ;;  %v1402_v39 = vshll.u32 %v3153_v1, 16  ;;  %v1496_v40 = vshrl.u32 %v3144_v26, 16  ;;  %v1503_v42 = vshll.u32 %v3156_v32, 16  ;;  %v3202_v62 = vld [vmem:[%s3070_s30 + $0x80] ss:$0 sps:$4 sm:$0x11]  }
  0x30   : > { %v1164_v38 = vsel %vm694_vm0, %v1162_v30, %v1163_v31  ;;  %v1500_v41 = vrot.slane %v1498_v34, 1  ;;  %v1407_v43 = vshll.u32 %v3167_v36, 16  ;;  %v1510_v45 = vshll.u32 %v3159_v33, 16  ;;  %v2820_v28 = vld [vmem:[%s3070_s30 + $0x8c] ss:$0 sps:$4 sm:$0x11]  }
  0x31   : > { %v1414_v46 = vshll.u32 %v3164_v35, 16  ;;  %v1400_v47 = vshrl.u32 %v3153_v1, 16  ;;  %v1404_v48 = vrot.slane %v1402_v39, 1  ;;  %v1505_v52 = vrot.slane %v1503_v42, 1 }
  0x32   : > { %1143 = vrot.lane.b32.xlu1 %v1042_v15, %s2983_s7  ;;  %v1501_v51 = vor.u32 %v1500_v41, %v1496_v40  ;;  %v1508_v53 = vshrl.u32 %v3159_v33, 16  ;;  %v1412_v54 = vshrl.u32 %v3164_v35, 16  ;;  %v1409_v56 = vrot.slane %v1407_v43, 1  ;;  %v2822_v31 = vld [vmem:[%s3070_s30 + $0x2c] ss:$0 sps:$4 sm:$0x11]  }
  0x33   : > { %1127 = vrot.lane.b32.xlu0 %v946_v5, %s2983_s7  ;;  %v1512_v57 = vrot.slane %v1510_v45, 1  ;;  %v1515_v58 = vshll.u32 %v3178_v44, 16  ;;  %v1416_v59 = vrot.slane %v1414_v46, 1  ;;  %v1405_v60 = vor.u32 %v1404_v48, %v1400_v47 }
  0x34   : > { %v1419_v61 = vshll.u32 %v3185_v49, 16  ;;  %v1506_v2 = vsel %vm469_vm1, %v1501_v51, %v1505_v52  ;;  %v593_v6 = vshll.u32 %v3188_v50, 16  ;;  %v497_v10 = vshll.u32 %v3195_v55, 16 }
  0x35   : > { %v1513_v3 = vor.u32 %v1512_v57, %v1508_v53  ;;  %v1517_v4 = vrot.slane %v1515_v58, 1  ;;  %v1410_v7 = vsel %vm469_vm1, %v1405_v60, %v1409_v56  ;;  %v1417_v8 = vor.u32 %v1416_v59, %v1412_v54  ;;  %v3264_v58 = vld [vmem:[%s3070_s30 + $0x84] sm:$0xff]  }
  0x36   : > { %1145 = vrot.lane.b32.xlu1 %v1054_v20, %s2983_s7  ;;  %v1421_v9 = vrot.slane %v1419_v61, 1  ;;  %v1647_v11 = vrot.slane %v3144_v26, 1  ;;  %v1648_v12 = vrot.slane %v3156_v32, 1  ;;  %v598_v13 = vshll.u32 %v3202_v62, 16  ;;  %v3268_v59 = vld [vmem:[%s3070_s30 + $0x24] sm:$0xff]  }
  0x37   : > { %1129 = vrot.lane.b32.xlu0 %v958_v23, %s2983_s7  ;;  %v502_v14 = vshll.u32 %v3205_v63, 16  ;;  %v1518_v15 = vsel %vm469_vm1, %v1513_v3, %v1517_v4  ;;  %v1623_v16 = vrot.slane %v3153_v1, 1  ;;  %v591_v17 = vshrl.u32 %v3188_v50, 16  ;;  %v3231_v23 = vld [vmem:[%s3070_s30 + $0x24] sm:$0xff]   ;;  %v3279_v3 = vld [vmem:[%s3070_s30 + $0x90] sm:$0xff]  }
  0x38   : > { %v595_v5 = vrot.slane %v593_v6, 1  ;;  %v1422_v19 = vsel %vm469_vm1, %v1417_v8, %v1421_v9  ;;  %v1624_v20 = vrot.slane %v3167_v36, 1  ;;  %v495_v21 = vshrl.u32 %v3195_v55, 16  ;;  %v3287_v8 = vld [vmem:[%s3070_s30 + $0x30] sm:$0xff]  }
  0x39   : > { %v499_v22 = vrot.slane %v497_v10, 1  ;;  %v600_v24 = vrot.slane %v598_v13, 1  ;;  %v504_v25 = vrot.slane %v502_v14, 1  ;;  %v605_v0 = vshll.u32 %v3225_v18, 16 }
  0x3a   : > { %1223 = vrot.lane.b32.xlu1 %v1185_v27, %s2984_s8  ;;  %v596_v27 = vor.u32 %v595_v5, %v591_v17  ;;  %v1650_v32 = vrot.slane %v3159_v33, 1  ;;  %v1651_v34 = vrot.slane %v3178_v44, 1  ;;  %v1626_v36 = vrot.slane %v3164_v35, 1  ;;  %v3290_v9 = vld [vmem:[%s3070_s30 + $0x2c] ss:$0 sps:$4 sm:$0x11]  }
  0x3b   : > { %1207 = vrot.lane.b32.xlu0 %v1161_v29, %s2984_s8  ;;  %v1625_v29 = vsel %vm694_vm0, %v1623_v16, %v1624_v20  ;;  %v500_v30 = vor.u32 %v499_v22, %v495_v21  ;;  %v603_v39 = vshrl.u32 %v3225_v18, 16  ;;  %v607_v40 = vrot.slane %v605_v0, 1  ;;  %v3299_v17 = vld [vmem:[%s3070_s30 + $0x98] ss:$0 sps:$4 sm:$0x11]   ;;  %v2857_v20 = vld [vmem:[%s4249_s1 + $0x10] sm:$0xff]  }
  0x3c   : > { %v610_v41 = vshll.u32 %v2820_v28, 16  ;;  %v507_v43 = vshrl.u32 %v3231_v23, 16  ;;  %v725_v52 = vrot.slane %v3188_v50, 1  ;;  %v726_v53 = vrot.slane %v3202_v62, 1  ;;  %2682 = vmatprep.subr.bf16.mxu0 %v2857_v20  ;;  %2720 = vmatprep.subr.bf16.mxu1 %v2857_v20 }
  0x3d   : > { %v505_v42 = vsel %vm469_vm1, %v500_v30, %v504_v25  ;;  %v608_v44 = vor.u32 %v607_v40, %v603_v39  ;;  %v701_v56 = vrot.slane %v3195_v55, 1  ;;  %v702_v57 = vrot.slane %v3205_v63, 1  ;;  %2683 = vmatpush3.bf16.msra.mxu0 %v2857_v20  ;;  %2723 = vmatpush3.bf16.msra.mxu1 %v2857_v20 }
  0x3e   : > { %1225 = vrot.lane.b32.xlu1 %v1188_v37, %s2984_s8  ;;  %v1627_v37 = vrot.slane %v3185_v49, 1  ;;  %v612_v46 = vrot.slane %v610_v41, 1  ;;  %v727_v50 = vsel %vm694_vm0, %v725_v52, %v726_v53  ;;  %v728_v60 = vrot.slane %v3225_v18, 1  ;;  %v3353_v52 = vld [vmem:[%s3070_s30 + $0x98] ss:$0 sps:$4 sm:$0x11]  }
  0x3f   : > { %1209 = vrot.lane.b32.xlu0 %v1164_v38, %s2984_s8  ;;  %v601_v38 = vsel %vm469_vm1, %v596_v27, %v600_v24  ;;  %v729_v61 = vrot.slane %v2820_v28, 1  ;;  %v704_v62 = vrot.slane %v3231_v23, 1  ;;  %v703_v55 = vsel %vm694_vm0, %v701_v56, %v702_v57  ;;  %v3363_v57 = vld [vmem:[%s3070_s30 + $0x9c] sm:$0xff]  }
  0x40   : > { %v1628_v47 = vsel %vm694_vm0, %v1626_v36, %v1627_v37  ;;  %v613_v51 = vsel %vm469_vm1, %v608_v44, %v612_v46  ;;  %v705_v63 = vrot.slane %v2822_v31, 1  ;;  %v1058_v4 = vshll.u32 %v3264_v58, 16  ;;  %v2860_v37 = vld [vmem:[%s4249_s1 + $0x8] sm:$0xff]  }
  0x41   : > { %v962_v6 = vshll.u32 %v3268_v59, 16  ;;  %v960_v14 = vshrl.u32 %v3268_v59, 16  ;;  %v967_v5 = vshll.u32 %v3290_v9, 16  ;;  %v974_v18 = vshll.u32 %v3287_v8, 16  ;;  %2684 = vmatprep.subr.bf16.mxu0 %v2860_v37  ;;  %2721 = vmatprep.subr.bf16.mxu1 %v2860_v37 }
  0x42   : > { %1335 = vrot.lane.b32.xlu1 %v3144_v26, %s2985_s9  ;;  %v1649_v26 = vsel %vm694_vm0, %v1647_v11, %v1648_v12  ;;  %v706_v10 = vsel %vm694_vm0, %v704_v62, %v705_v63  ;;  %v1056_v11 = vshrl.u32 %v3264_v58, 16  ;;  %v1060_v12 = vrot.slane %v1058_v4, 1  ;;  %2685 = vmatpush3.bf16.msra.mxu0 %v2860_v37 }
  0x43   : > { %1319 = vrot.lane.b32.xlu0 %v3153_v1, %s2985_s9  ;;  %v509_v1 = vshll.u32 %v3231_v23, 16  ;;  %v964_v16 = vrot.slane %v962_v6, 1  ;;  %v1068_v21 = vshrl.u32 %v3279_v3, 16  ;;  %v972_v22 = vshrl.u32 %v3287_v8, 16  ;;  %2724 = vmatpush3.bf16.msra.mxu1 %v2860_v37 }
  0x44   : > { %v1061_v23 = vor.u32 %v1060_v12, %v1056_v11  ;;  %v969_v28 = vrot.slane %v967_v5, 1  ;;  %v976_v0 = vrot.slane %v974_v18, 1  ;;  %v1189_v40 = vrot.slane %v3264_v58, 1  ;;  %v3381_v6 = vld [vmem:[%s3070_s30 + $0x44] ss:$0 sps:$4 sm:$0x11]  }
  0x45   : > { %v511_v45 = vrot.slane %v509_v1, 1  ;;  %v965_v27 = vor.u32 %v964_v16, %v960_v14  ;;  %v1192_v44 = vrot.slane %v3279_v3, 1  ;;  %v1193_v46 = vrot.slane %v3299_v17, 1 }
  0x46   : > { %1337 = vrot.lane.b32.xlu1 %v3159_v33, %s2985_s9  ;;  %v514_v33 = vshll.u32 %v2822_v31, 16  ;;  %v1534_v4 = vshll.u32 %v3363_v57, 16  ;;  %v1532_v11 = vshrl.u32 %v3363_v57, 16  ;;  %v1443_v18 = vshll.u32 %v3381_v6, 16 }
  0x47   : > { %1321 = vrot.lane.b32.xlu0 %v3164_v35, %s2985_s9  ;;  %v1652_v35 = vsel %vm694_vm0, %v1650_v32, %v1651_v34  ;;  %v512_v48 = vor.u32 %v511_v45, %v507_v43  ;;  %v970_v32 = vsel %vm469_vm1, %v965_v27, %v969_v28  ;;  %v977_v34 = vor.u32 %v976_v0, %v972_v22 }
  0x48   : > { %v516_v49 = vrot.slane %v514_v33, 1  ;;  %v1165_v43 = vrot.slane %v3268_v59, 1  ;;  %v1166_v45 = vrot.slane %v3290_v9, 1  ;;  %v3340_v33 = vld [vmem:[%s3070_s30 + $0x90] sm:$0xff]   ;;  %v1194_v56 = vsel %vm694_vm0, %v1192_v44, %v1193_v46 }
  0x49   : > { %v1522_v53 = vshll.u32 %v3340_v33, 16  ;;  %v1536_v14 = vrot.slane %v1534_v4, 1  ;;  %v1445_v0 = vrot.slane %v1443_v18, 1 }
  0x4a   : > { %1607 = vrot.lane.b32.xlu1 %v1506_v2, %s2986_s10  ;;  %v517_v54 = vsel %vm469_vm1, %v512_v48, %v516_v49  ;;  %v3276_v2 = vld [vmem:[%s3070_s30 + $0x8c] ss:$0 sps:$4 sm:$0x11]   ;;  %v1167_v48 = vsel %vm694_vm0, %v1165_v43, %v1166_v45  ;;  %v1168_v49 = vrot.slane %v3287_v8, 1 }
  0x4b   : > { %1591 = vrot.lane.b32.xlu0 %v1410_v7, %s2986_s10  ;;  %v730_v7 = vsel %vm694_vm0, %v728_v60, %v729_v61  ;;  %v1063_v13 = vshll.u32 %v3276_v2, 16  ;;  %v1190_v41 = vrot.slane %v3276_v2, 1  ;;  %v1520_v60 = vshrl.u32 %v3340_v33, 16  ;;  %v3376_v2 = vld [vmem:[%s3070_s30 + $0xa4] ss:$0 sps:$4 sm:$0x11]  }
  0x4c   : > { %v1524_v62 = vrot.slane %v1522_v53, 1  ;;  %v1537_v22 = vor.u32 %v1536_v14, %v1532_v11  ;;  %v2846_v53 = vld [vmem:[%s3070_s30 + $0x44] ss:$0 sps:$4 sm:$0x11]  }
  0x4d   : > { %v1065_v24 = vrot.slane %v1063_v13, 1  ;;  %v3392_v13 = vld [vmem:[%s3070_s30 + $0x30] sm:$0xff]  }
  0x4e   : > { %1609 = vrot.lane.b32.xlu1 %v1518_v15, %s2986_s10  ;;  %v1070_v15 = vshll.u32 %v3279_v3, 16  ;;  %v1525_v9 = vor.u32 %v1524_v62, %v1520_v60 }
  0x4f   : > { %1593 = vrot.lane.b32.xlu0 %v1422_v19, %s2986_s10  ;;  %v3305_v19 = vld [vmem:[%s3070_s30 + $0x38] ss:$0 sps:$4 sm:$0x11]   ;;  %v1066_v30 = vsel %vm469_vm1, %v1061_v23, %v1065_v24  ;;  %v1653_v24 = vrot.slane %v3340_v33, 1 }
  0x50   : > { %v1072_v25 = vrot.slane %v1070_v15, 1  ;;  %v1539_v15 = vshll.u32 %v3376_v2, 16 }
  0x52   : > { %1687 = vrot.lane.b32.xlu1 %v1649_v26, %s2987_s11  ;;  %v1075_v26 = vshll.u32 %v3299_v17, 16  ;;  %v1073_v31 = vor.u32 %v1072_v25, %v1068_v21  ;;  %v1541_v23 = vrot.slane %v1539_v15, 1  ;;  %v3409_v25 = vld [vmem:[%s3070_s30 + $0x38] ss:$0 sps:$4 sm:$0x11]  }
  0x53   : > { %1671 = vrot.lane.b32.xlu0 %v1625_v29, %s2987_s11  ;;  %v979_v29 = vshll.u32 %v3305_v19, 16  ;;  %v526_v43 = vshll.u32 %v3409_v25, 16 }
  0x54   : > { %v1077_v1 = vrot.slane %v1075_v26, 1  ;;  %v521_v26 = vshll.u32 %v3392_v13, 16 }
  0x55   : > { %v981_v36 = vrot.slane %v979_v29, 1  ;;  %v1654_v29 = vrot.slane %v3353_v52, 1 }
  0x56   : > { %682 = vrot.lane.b32.xlu1 %v601_v38, %s2982_s6  ;;  %v2863_v38 = vld [vmem:[%s4249_s1] sm:$0xff]   ;;  %v1078_v39 = vsel %vm469_vm1, %v1073_v31, %v1077_v1 }
  0x57   : > { %666 = vrot.lane.b32.xlu0 %v505_v42, %s2982_s6  ;;  %v982_v42 = vsel %vm469_vm1, %v977_v34, %v981_v36  ;;  %2686 = vmatprep.subr.bf16.mxu0 %v2863_v38  ;;  %v3421_v36 = vld [vmem:[%s3070_s30 + $0x9c] sm:$0xff]   ;;  %v1655_v44 = vsel %vm694_vm0, %v1653_v24, %v1654_v29  ;;  %v708_v24 = vrot.slane %v3409_v25, 1 }
  0x58   : > { %2722 = vmatprep.subr.bf16.mxu1 %v2863_v38  ;;  %2687 = vmatpush3.bf16.msra.mxu0 %v2863_v38  ;;  %v627_v62 = vshrl.u32 %v3421_v36, 16 }
  0x59   : > { %2725 = vmatpush3.bf16.msra.mxu1 %v2863_v38  ;;  %v519_v38 = vshrl.u32 %v3392_v13, 16 }
  0x5a   : > { %1689 = vrot.lane.b32.xlu1 %v1652_v35, %s2987_s11  ;;  %v1191_v35 = vsel %vm694_vm0, %v1189_v40, %v1190_v41  ;;  %v1542_v41 = vsel %vm469_vm1, %v1537_v22, %v1541_v23  ;;  %v707_v23 = vrot.slane %v3392_v13, 1 }
  0x5b   : > { %1673 = vrot.lane.b32.xlu0 %v1628_v47, %s2987_s11  ;;  %v3347_v47 = vld [vmem:[%s3070_s30 + $0x30] sm:$0xff]  }
  0x5c   : > { %v1424_v61 = vshrl.u32 %v3347_v47, 16  ;;  %v1629_v31 = vrot.slane %v3347_v47, 1  ;;  %v709_v25 = vsel %vm694_vm0, %v707_v23, %v708_v24 }
  0x5e   : > { %684 = vrot.lane.b32.xlu1 %v613_v51, %s2982_s6  ;;  %v1169_v51 = vrot.slane %v3305_v19, 1  ;;  %v3399_v19 = vld [vmem:[%s3070_s30 + $0x98] ss:$0 sps:$4 sm:$0x11]  }
  0x5f   : > { %668 = vrot.lane.b32.xlu0 %v517_v54, %s2982_s6  ;;  %v3358_v54 = vld [vmem:[%s3070_s30 + $0x38] ss:$0 sps:$4 sm:$0x11]   ;;  %v622_v34 = vshll.u32 %v3399_v19, 16 }
  0x60   : > { %v1431_v63 = vshll.u32 %v3358_v54, 16  ;;  %v1630_v1 = vrot.slane %v3358_v54, 1 }
  0x62   : > { %763 = vrot.lane.b32.xlu1 %v727_v50, %s2981_s5  ;;  %v3368_v50 = vld [vmem:[%s3070_s30 + $0x3c] sm:$0xff]   ;;  %v1433_v17 = vrot.slane %v1431_v63, 1 }
  0x63   : > { %747 = vrot.lane.b32.xlu0 %v703_v55, %s2981_s5  ;;  %v1527_v55 = vshll.u32 %v3353_v52, 16  ;;  %v1436_v12 = vshrl.u32 %v3368_v50, 16  ;;  %v528_v52 = vrot.slane %v526_v43, 1  ;;  %v1632_v60 = vrot.slane %v3368_v50, 1 }
  0x64   : > { %v3514_v43 = vld [vmem:[%s3070_s30 + $0x44] ss:$0 sps:$4 sm:$0x11]  }
  0x66   : > { %765 = vrot.lane.b32.xlu1 %v730_v7, %s2981_s5  ;;  %v1438_v7 = vshll.u32 %v3368_v50, 16 }
  0x67   : > { %749 = vrot.lane.b32.xlu0 %v706_v10, %s2981_s5  ;;  %v1529_v10 = vrot.slane %v1527_v55, 1 }
  0x68   : > { %v1440_v5 = vrot.slane %v1438_v7, 1 }
  0x69   : > { %v1530_v20 = vsel %vm469_vm1, %v1525_v9, %v1529_v10 }
  0x6a   : > { %875 = vrot.lane.b32.xlu1 %v3264_v58, %s2980_s4  ;;  %v1426_v58 = vshll.u32 %v3347_v47, 16  ;;  %v1441_v28 = vor.u32 %v1440_v5, %v1436_v12 }
  0x6b   : > { %859 = vrot.lane.b32.xlu0 %v3268_v59, %s2980_s4  ;;  %v1170_v59 = vsel %vm694_vm0, %v1168_v49, %v1169_v51  ;;  %v1631_v49 = vsel %vm694_vm0, %v1629_v31, %v1630_v1  ;;  %v711_v31 = vrot.slane %v2846_v53, 1 }
  0x6c   : > { %v1446_v45 = vsel %vm469_vm1, %v1441_v28, %v1445_v0  ;;  %v3488_v0 = vld [vmem:[%s3070_s30 + $0x3c] sm:$0xff]  }
  0x6e   : > { %877 = vrot.lane.b32.xlu1 %v3279_v3, %s2980_s4  ;;  %v1428_v3 = vrot.slane %v1426_v58, 1  ;;  %v1656_v58 = vrot.slane %v3363_v57, 1 }
  0x6f   : > { %861 = vrot.lane.b32.xlu0 %v3287_v8, %s2980_s4  ;;  %v3385_v8 = vld [vmem:[%s3070_s30 + $0x90] sm:$0xff]  }
  0x70   : > { %v1429_v16 = vor.u32 %v1428_v3, %v1424_v61  ;;  %v617_v21 = vshll.u32 %v3385_v8, 16  ;;  %v1633_v61 = vrot.slane %v3381_v6, 1  ;;  %v731_v18 = vrot.slane %v3385_v8, 1 }
  0x72   : > { %1147 = vrot.lane.b32.xlu1 %v1066_v30, %s2983_s7  ;;  %v1434_v27 = vsel %vm469_vm1, %v1429_v16, %v1433_v17  ;;  %v619_v37 = vrot.slane %v617_v21, 1  ;;  %v1634_v14 = vsel %vm694_vm0, %v1632_v60, %v1633_v61 }
  0x73   : > { %1131 = vrot.lane.b32.xlu0 %v970_v32, %s2983_s7  ;;  %v615_v32 = vshrl.u32 %v3385_v8, 16 }
  0x75   : > { %v620_v46 = vor.u32 %v619_v37, %v615_v32  ;;  %v3504_v37 = vld [vmem:[%s3070_s30 + $0xa4] ss:$0 sps:$4 sm:$0x11]  }
  0x76   : > { %1149 = vrot.lane.b32.xlu1 %v1078_v39, %s2983_s7  ;;  %v3426_v39 = vld [vmem:[%s3070_s30 + $0x3c] sm:$0xff]  }
  0x77   : > { %1133 = vrot.lane.b32.xlu0 %v982_v42, %s2983_s7  ;;  %v523_v42 = vrot.slane %v521_v26, 1  ;;  %v533_v54 = vshll.u32 %v3426_v39, 16  ;;  %v531_v7 = vshrl.u32 %v3426_v39, 16  ;;  %v710_v29 = vrot.slane %v3426_v39, 1 }
  0x79   : > { %v524_v51 = vor.u32 %v523_v42, %v519_v38  ;;  %v535_v9 = vrot.slane %v533_v54, 1  ;;  %v986_v38 = vshll.u32 %v3488_v0, 16  ;;  %v712_v39 = vsel %vm694_vm0, %v710_v29, %v711_v31  ;;  %v3511_v42 = vld [vmem:[%s3070_s30 + $0x48] sm:$0xff]   ;;  %v3531_v54 = vld [vmem:[%s3070_s30 + $0x50] ss:$0 sps:$4 sm:$0x11]  }
  0x7a   : > { %1227 = vrot.lane.b32.xlu1 %v1191_v35, %s2984_s8  ;;  %v1171_v29 = vrot.slane %v3488_v0, 1  ;;  %v1172_v31 = vrot.slane %v3514_v43, 1 }
  0x7b   : > { %1211 = vrot.lane.b32.xlu0 %v1167_v48, %s2984_s8  ;;  %v629_v48 = vshll.u32 %v3421_v36, 16  ;;  %v536_v15 = vor.u32 %v535_v9, %v531_v7  ;;  %v996_v9 = vshrl.u32 %v3511_v42, 16 }
  0x7d   : > { %v631_v3 = vrot.slane %v629_v48, 1  ;;  %v988_v48 = vrot.slane %v986_v38, 1 }
  0x7e   : > { %1229 = vrot.lane.b32.xlu1 %v1194_v56, %s2984_s8 }
  0x7f   : > { %1213 = vrot.lane.b32.xlu0 %v1170_v59, %s2984_s8  ;;  %v1657_v59 = vrot.slane %v3376_v2, 1  ;;  %v538_v2 = vshll.u32 %v2846_v53, 16  ;;  %v632_v6 = vor.u32 %v631_v3, %v627_v62  ;;  %v991_v53 = vshll.u32 %v3514_v43, 16 }
  0x81   : > { %v540_v16 = vrot.slane %v538_v2, 1  ;;  %v993_v7 = vrot.slane %v991_v53, 1 }
  0x82   : > { %1339 = vrot.lane.b32.xlu1 %v3340_v33, %s2985_s9  ;;  %v624_v33 = vrot.slane %v622_v34, 1 }
  0x83   : > { %1323 = vrot.lane.b32.xlu0 %v3347_v47, %s2985_s9  ;;  %v2844_v47 = vld [vmem:[%s3070_s30 + $0xa4] ss:$0 sps:$4 sm:$0x11]   ;;  %v541_v22 = vsel %vm469_vm1, %v536_v15, %v540_v16 }
  0x84   : > { %v625_v63 = vsel %vm469_vm1, %v620_v46, %v624_v33  ;;  %v634_v4 = vshll.u32 %v2844_v47, 16  ;;  %v735_v28 = vrot.slane %v2844_v47, 1  ;;  %v984_v46 = vshrl.u32 %v3488_v0, 16 }
  0x85   : > { %v1087_v47 = vshll.u32 %v3504_v37, 16 }
  0x86   : > { %1341 = vrot.lane.b32.xlu1 %v3363_v57, %s2985_s9  ;;  %v529_v57 = vsel %vm469_vm1, %v524_v51, %v528_v52  ;;  %v636_v11 = vrot.slane %v634_v4, 1 }
  0x87   : > { %1325 = vrot.lane.b32.xlu0 %v3368_v50, %s2985_s9  ;;  %v1658_v50 = vsel %vm694_vm0, %v1656_v58, %v1657_v59  ;;  %v998_v58 = vshll.u32 %v3511_v42, 16  ;;  %v1089_v62 = vrot.slane %v1087_v47, 1  ;;  %v1173_v47 = vsel %vm694_vm0, %v1171_v29, %v1172_v31 }
  0x88   : > { %v637_v5 = vsel %vm469_vm1, %v632_v6, %v636_v11 }
  0x89   : > { %v1000_v2 = vrot.slane %v998_v58, 1  ;;  %v3596_v58 = vld [vmem:[%s3070_s30 + $0x50] ss:$0 sps:$4 sm:$0x11]  }
  0x8a   : > { %1611 = vrot.lane.b32.xlu1 %v1530_v20, %s2986_s10  ;;  %v732_v20 = vrot.slane %v3399_v19, 1  ;;  %v734_v19 = vrot.slane %v3421_v36, 1  ;;  %v3501_v36 = vld [vmem:[%s3070_s30 + $0xa8] sm:$0xff]  }
  0x8b   : > { %1595 = vrot.lane.b32.xlu0 %v1434_v27, %s2986_s10  ;;  %v3482_v27 = vld [vmem:[%s3070_s30 + $0x9c] sm:$0xff]   ;;  %v1094_v51 = vshll.u32 %v3501_v36, 16  ;;  %v1092_v61 = vshrl.u32 %v3501_v36, 16 }
  0x8c   : > { %v3414_v30 = vpop.permute.xlu1 %871  ;;  %v733_v8 = vsel %vm694_vm0, %v731_v18, %v732_v20  ;;  %v1082_v32 = vshll.u32 %v3482_v27, 16  ;;  %v736_v34 = vsel %vm694_vm0, %v734_v19, %v735_v28  ;;  %v1080_v33 = vshrl.u32 %v3482_v27, 16 }
  0x8d   : > { %v3429_v40 = vpop.permute.xlu0 %855  ;;  %v1096_v3 = vrot.slane %v1094_v51, 1  ;;  %v1001_v18 = vor.u32 %v1000_v2, %v996_v9  ;;  %v1195_v24 = vrot.slane %v3482_v27, 1 }
  0x8e   : > { %1613 = vrot.lane.b32.xlu1 %v1542_v41, %s2986_s10 }
  0x8f   : > { %1597 = vrot.lane.b32.xlu0 %v1446_v45, %s2986_s10 }
  0x90   : > { %v3436_v35 = vpop.permute.xlu1 %759 }
  0x91   : > { %v3444_v56 = vpop.permute.xlu0 %743 }
  0x92   : > { %1691 = vrot.lane.b32.xlu1 %v1655_v44, %s2987_s11  ;;  %v1084_v44 = vrot.slane %v1082_v32, 1  ;;  %v3572_v32 = vld [vmem:[%s3070_s30 + $0xb0] ss:$0 sps:$4 sm:$0x11]  }
  0x93   : > { %1675 = vrot.lane.b32.xlu0 %v1631_v49, %s2987_s11  ;;  %v3524_v49 = vld [vmem:[%s3070_s30 + $0xb0] ss:$0 sps:$4 sm:$0x11]   ;;  %v1551_v53 = vshll.u32 %v3572_v32, 16 }
  0x94   : > { %v3453_v55 = vpop.permute.xlu1 %761  ;;  %v1085_v60 = vor.u32 %v1084_v44, %v1080_v33  ;;  %v1099_v4 = vshll.u32 %v3524_v49, 16  ;;  %v1199_v43 = vrot.slane %v3524_v49, 1  ;;  %v1174_v33 = vrot.slane %v3511_v42, 1 }
  0x95   : > { %v3458_v10 = vpop.permute.xlu0 %745  ;;  %v1175_v44 = vrot.slane %v3531_v54, 1  ;;  %v1553_v2 = vrot.slane %v1551_v53, 1  ;;  %v2892_v53 = vld [vmem:[%s3070_s30 + $0x6c] sm:$0xff]  }
  0x96   : > { %686 = vrot.lane.b32.xlu1 %v625_v63, %s2982_s6  ;;  %v989_v63 = vor.u32 %v988_v48, %v984_v46  ;;  %v1090_v11 = vsel %vm469_vm1, %v1085_v60, %v1089_v62  ;;  %v1101_v15 = vrot.slane %v1099_v4, 1  ;;  %v2891_v62 = vld [vmem:[%s3070_s30] sm:$0xff]   ;;  %v3615_v4 = vld [vmem:[%s3070_s30 + $0xbc] ss:$0 sps:$4 sm:$0x11]  }
  0x97   : > { %670 = vrot.lane.b32.xlu0 %v529_v57, %s2982_s6 }
  0x98   : > { %v3463_v12 = vpop.permute.xlu1 %664 }
  0x99   : > { %v3466_v17 = vpop.permute.xlu0 %662 }
  0x9a   : > { %1693 = vrot.lane.b32.xlu1 %v1658_v50, %s2987_s11  ;;  %v1003_v50 = vshll.u32 %v3531_v54, 16  ;;  %v2890_v54 = vld [vmem:[%s3070_s30 + $0x60] sm:$0xff]  }
  0x9b   : > { %1677 = vrot.lane.b32.xlu0 %v1634_v14, %s2987_s11  ;;  %v1097_v14 = vor.u32 %v1096_v3, %v1092_v61 }
  0x9c   : > { %v3473_v21 = vpop.permute.xlu1 %680  ;;  %v1005_v20 = vrot.slane %v1003_v50, 1  ;;  %v1455_v50 = vshll.u32 %v3596_v58, 16 }
  0x9d   : > { %v3478_v26 = vpop.permute.xlu0 %678  ;;  %v1102_v19 = vsel %vm469_vm1, %v1097_v14, %v1101_v15 }
  0x9e   : > { %688 = vrot.lane.b32.xlu1 %v637_v5, %s2982_s6  ;;  %v994_v5 = vsel %vm469_vm1, %v989_v63, %v993_v7  ;;  %v1721_v60 = vsel %vm1703_vm2, %v2890_v54, %v3478_v26  ;;  %v1705_v63 = vsel %vm1703_vm2, %v2891_v62, %v3466_v17  ;;  %v1176_v26 = vsel %vm694_vm0, %v1174_v33, %v1175_v44  ;;  %v2893_v62 = vld [vmem:[%s3070_s30 + $0xc] sm:$0xff]  }
  0x9f   : > { %672 = vrot.lane.b32.xlu0 %v541_v22, %s2982_s6  ;;  %v3557_v22 = vld [vmem:[%s3070_s30 + $0xa8] sm:$0xff]   ;;  %v1457_v29 = vrot.slane %v1455_v50, 1  ;;  %v3683_v50 = vld [vmem:[%s3070_s30 + $0xb0] ss:$0 sps:$4 sm:$0x11]  }
  0xa0   : > { %v3490_v13 = vpop.permute.xlu1 %873  ;;  %v1544_v48 = vshrl.u32 %v3557_v22, 16 }
  0xa1   : > { %v3494_v1 = vpop.permute.xlu0 %857 }
  0xa2   : > { %767 = vrot.lane.b32.xlu1 %v733_v8, %s2981_s5  ;;  %v1196_v8 = vrot.slane %v3504_v37, 1 }
  0xa3   : > { %751 = vrot.lane.b32.xlu0 %v709_v25, %s2981_s5  ;;  %v1006_v25 = vsel %vm469_vm1, %v1001_v18, %v1005_v20  ;;  %v1738_v18 = vsel %vm1736_vm3, %v1705_v63, %v3444_v56  ;;  %v1707_v63 = vsel %vm1703_vm2, %v2893_v62, %v3463_v12 }
  0xa4   : > { %v3507_v41 = vpop.permute.xlu1 %1143  ;;  %v1197_v37 = vsel %vm694_vm0, %v1195_v24, %v1196_v8  ;;  %v3630_v8 = vld [vmem:[%s3070_s30 + $0x5c] ss:$0 sps:$4 sm:$0x11]  }
  0xa5   : > { %v3516_v45 = vpop.permute.xlu0 %1127 }
  0xa6   : > { %769 = vrot.lane.b32.xlu1 %v736_v34, %s2981_s5  ;;  %v1546_v34 = vshll.u32 %v3557_v22, 16 }
  0xa7   : > { %753 = vrot.lane.b32.xlu0 %v712_v39, %s2981_s5  ;;  %v3583_v39 = vld [vmem:[%s3070_s30 + $0xb4] sm:$0xff]  }
  0xa8   : > { %v3527_v52 = vpop.permute.xlu1 %1145  ;;  %v1548_v51 = vrot.slane %v1546_v34, 1  ;;  %v1558_v61 = vshll.u32 %v3583_v39, 16  ;;  %v1556_v20 = vshrl.u32 %v3583_v39, 16 }
  0xa9   : > { %v3534_v59 = vpop.permute.xlu0 %1129 }
  0xaa   : > { %879 = vrot.lane.b32.xlu1 %v3482_v27, %s2980_s4  ;;  %v3578_v27 = vld [vmem:[%s3070_s30 + $0x48] sm:$0xff]   ;;  %v1549_v9 = vor.u32 %v1548_v51, %v1544_v48  ;;  %v1560_v24 = vrot.slane %v1558_v61, 1 }
  0xab   : > { %863 = vrot.lane.b32.xlu0 %v3488_v0, %s2980_s4  ;;  %v1198_v0 = vrot.slane %v3501_v36, 1  ;;  %v1450_v49 = vshll.u32 %v3578_v27, 16  ;;  %v1448_v14 = vshrl.u32 %v3578_v27, 16  ;;  %v3659_v51 = vld [vmem:[%s3070_s30 + $0xa8] sm:$0xff]  }
  0xac   : > { %v3542_v57 = vpop.permute.xlu1 %1223  ;;  %v1554_v56 = vsel %vm469_vm1, %v1549_v9, %v1553_v2  ;;  %v3669_v61 = vld [vmem:[%s3070_s30 + $0x48] sm:$0xff]   ;;  %v1635_v2 = vrot.slane %v3578_v27, 1 }
  0xad   : > { %v3546_v6 = vpop.permute.xlu0 %1207  ;;  %v1200_v3 = vsel %vm694_vm0, %v1198_v0, %v1199_v43  ;;  %v1452_v15 = vrot.slane %v1450_v49, 1  ;;  %v1723_v49 = vsel %vm1703_vm2, %v2892_v53, %v3473_v21  ;;  %v2871_v53 = vld [vmem:[%s3070_s30 + $0xbc] ss:$0 sps:$4 sm:$0x11]  }
  0xae   : > { %881 = vrot.lane.b32.xlu1 %v3501_v36, %s2980_s4  ;;  %v1756_v12 = vsel %vm1736_vm3, %v1723_v49, %v3453_v55  ;;  %v1636_v55 = vrot.slane %v3596_v58, 1 }
  0xaf   : > { %865 = vrot.lane.b32.xlu0 %v3511_v42, %s2980_s4  ;;  %v3601_v42 = vld [vmem:[%s3070_s30 + $0x54] sm:$0xff]   ;;  %v1453_v43 = vor.u32 %v1452_v15, %v1448_v14  ;;  %v641_v14 = vshll.u32 %v3659_v51, 16  ;;  %v1789_v15 = vsel %vm1769_vm4, %v1756_v12, %v3490_v13 }
  0xb0   : > { %v3553_v16 = vpop.permute.xlu1 %1225  ;;  %v1460_v31 = vshrl.u32 %v3601_v42, 16  ;;  %v1822_v13 = vsel %vm1802_vm5, %v1789_v15, %v3527_v52 }
  0xb1   : > { %v3559_v23 = vpop.permute.xlu0 %1209  ;;  %v1458_v9 = vsel %vm469_vm1, %v1453_v43, %v1457_v29  ;;  %v1855_v29 = vsel %vm1835_vm6, %v1822_v13, %v3553_v16  ;;  %v3726_v43 = vld [vmem:[%s3070_s30 + $0xb4] sm:$0xff]  }
  0xb2   : > { %1151 = vrot.lane.b32.xlu1 %v1090_v11, %s2983_s7  ;;  %v1754_v11 = vsel %vm1736_vm3, %v1721_v60, %v3436_v35  ;;  %v1563_v35 = vshll.u32 %v3615_v4, 16  ;;  %v653_v49 = vshll.u32 %v3726_v43, 16 }
  0xb3   : > { %1135 = vrot.lane.b32.xlu0 %v994_v5, %s2983_s7  ;;  %v1462_v5 = vshll.u32 %v3601_v42, 16 }
  0xb4   : > { %v3566_v28 = vpop.permute.xlu1 %1335 }
  0xb5   : > { %v3575_v38 = vpop.permute.xlu0 %1319  ;;  %v1464_v33 = vrot.slane %v1462_v5, 1 }
  0xb6   : > { %1153 = vrot.lane.b32.xlu1 %v1102_v19, %s2983_s7  ;;  %v1787_v19 = vsel %vm1769_vm4, %v1754_v11, %v3414_v30 }
  0xb7   : > { %1137 = vrot.lane.b32.xlu0 %v1006_v25, %s2983_s7  ;;  %v1820_v34 = vsel %vm1802_vm5, %v1787_v19, %v3507_v41  ;;  %v1561_v41 = vor.u32 %v1560_v24, %v1556_v20  ;;  %v545_v20 = vshll.u32 %v3669_v61, 16  ;;  %v639_v19 = vshrl.u32 %v3659_v51, 16 }
  0xb8   : > { %v3590_v46 = vpop.permute.xlu1 %1337  ;;  %v1853_v44 = vsel %vm1835_vm6, %v1820_v34, %v3542_v57  ;;  %v1467_v57 = vshll.u32 %v3630_v8, 16 }
  0xb9   : > { %v3598_v36 = vpop.permute.xlu0 %1321  ;;  %v1886_v48 = vsel %vm1868_vm7, %v1853_v44, %v3566_v28  ;;  %v1660_v28 = vrot.slane %v3572_v32, 1  ;;  %v1888_v34 = vsel %vm1868_vm7, %v1855_v29, %v3590_v46  ;;  %v3734_v44 = vld [vmem:[%s3070_s30 + $0x54] sm:$0xff]  }
  0xba   : > { %1231 = vrot.lane.b32.xlu1 %v1197_v37, %s2984_s8  ;;  %v1771_v37 = vsel %vm1769_vm4, %v1738_v18, %v3429_v40  ;;  %v3701_v18 = vld [vmem:[%s3070_s30 + $0x50] ss:$0 sps:$4 sm:$0x11]  }
  0xbb   : > { %1215 = vrot.lane.b32.xlu0 %v1173_v47, %s2984_s8  ;;  %v1804_v30 = vsel %vm1802_vm5, %v1771_v37, %v3516_v45  ;;  %v1659_v47 = vrot.slane %v3557_v22, 1  ;;  %v1565_v45 = vrot.slane %v1563_v35, 1  ;;  %v643_v37 = vrot.slane %v641_v14, 1 }
  0xbc   : > { %v1608_v7 = vpop.permute.xlu1 %1607  ;;  %v1837_v40 = vsel %vm1835_vm6, %v1804_v30, %v3546_v6  ;;  %v547_v30 = vrot.slane %v545_v20, 1 }
  0xbd   : > { %v1592_v17 = vpop.permute.xlu0 %1591  ;;  %v1870_v54 = vsel %vm1868_vm7, %v1837_v40, %v3575_v38  ;;  %v1919_v6 = vsel %vm1901_vm8, %v1886_v48, %v1608_v7  ;;  %v1465_v7 = vor.u32 %v1464_v33, %v1460_v31  ;;  %v543_v31 = vshrl.u32 %v3669_v61, 16 }
  0xbe   : > { %1233 = vrot.lane.b32.xlu1 %v1200_v3, %s2984_s8  ;;  %v1903_v3 = vsel %vm1901_vm8, %v1870_v54, %v1592_v17  ;;  %v1469_v17 = vrot.slane %v1467_v57, 1 }
  0xbf   : > { %1217 = vrot.lane.b32.xlu0 %v1176_v26, %s2984_s8 }
  0xc0   : > { %v3634_v25 = vpop.permute.xlu1 %1609 }
  0xc1   : > { %v3642_v0 = vpop.permute.xlu0 %1593 }
  0xc2   : > { %1343 = vrot.lane.b32.xlu1 %v3557_v22, %s2985_s9  ;;  %v548_v22 = vor.u32 %v547_v30, %v543_v31  ;;  %v714_v31 = vrot.slane %v3701_v18, 1  ;;  %v3804_v30 = vld [vmem:[%s3070_s30 + $0x54] sm:$0xff]  }
  0xc3   : > { %1327 = vrot.lane.b32.xlu0 %v3578_v27, %s2985_s9  ;;  %v1740_v27 = vsel %vm1736_vm3, %v1707_v63, %v3458_v10  ;;  %v1566_v10 = vsel %vm469_vm1, %v1561_v41, %v1565_v45  ;;  %v1662_v63 = vrot.slane %v3583_v39, 1 }
  0xc4   : > { %v1688_v60 = vpop.permute.xlu1 %1687  ;;  %v1773_v24 = vsel %vm1769_vm4, %v1740_v27, %v3494_v1  ;;  %v646_v1 = vshll.u32 %v3683_v50, 16 }
  0xc5   : > { %v1672_v26 = vpop.permute.xlu0 %1671  ;;  %v1952_v21 = vsel %vm1934_vm9, %v1919_v6, %v1688_v60  ;;  %v1806_v58 = vsel %vm1802_vm5, %v1773_v24, %v3534_v59  ;;  %v1470_v59 = vsel %vm469_vm1, %v1465_v7, %v1469_v17  ;;  %v1637_v6 = vsel %vm694_vm0, %v1635_v2, %v1636_v55 }
  0xc6   : > { %1345 = vrot.lane.b32.xlu1 %v3583_v39, %s2985_s9  ;;  %v1936_v38 = vsel %vm1934_vm9, %v1903_v3, %v1672_v26  ;;  %v1977_v32 = vsel %vm1967_vm10, %v1952_v21, 0  ;;  %v1839_v52 = vsel %vm1835_vm6, %v1806_v58, %v3559_v23  ;;  %v550_v23 = vshll.u32 %v3701_v18, 16 }
  0xc7   : > { %1329 = vrot.lane.b32.xlu0 %v3601_v42, %s2985_s9  ;;  %v1969_v11 = vsel %vm1967_vm10, %v1936_v38, 0  ;;  %2704 = vmatprep.mubr.msk.bf16.mxu1 %vm2016_vm11, %v1977_v32  ;;  %v1872_v16 = vsel %vm1868_vm7, %v1839_v52, %v3598_v36  ;;  %v648_v57 = vrot.slane %v646_v1, 1  ;;  %v1663_v3 = vrot.slane %v3615_v4, 1 }
  0xc8   : > { %2688 = vmatprep.mubr.msk.bf16.mxu0 %vm2016_vm11, %v1969_v11  ;;  %v3697_v5 = vpop.permute.xlu1 %682  ;;  %v1905_v46 = vsel %vm1901_vm8, %v1872_v16, %v3642_v0  ;;  %v644_v0 = vor.u32 %v643_v37, %v639_v19  ;;  %v552_v60 = vrot.slane %v550_v23, 1  ;;  %v1638_v26 = vrot.slane %v3601_v42, 1  ;;  %v3797_v37 = vld [vmem:[%s3070_s30 + $0xb4] sm:$0xff]  }
  0xc9   : > { %v3708_v35 = vpop.permute.xlu0 %666  ;;  %v1639_v21 = vrot.slane %v3630_v8, 1  ;;  %v651_v38 = vshrl.u32 %v3726_v43, 16  ;;  %v655_v32 = vrot.slane %v653_v49, 1  ;;  %v658_v7 = vshll.u32 %v2871_v53, 16 }
  0xca   : > { %1615 = vrot.lane.b32.xlu1 %v1554_v56, %s2986_s10  ;;  %v1921_v56 = vsel %vm1901_vm8, %v1888_v34, %v3634_v25  ;;  %v1661_v25 = vsel %vm694_vm0, %v1659_v47, %v1660_v28  ;;  %v2873_v47 = vld [vmem:[%s3070_s30 + $0x5c] ss:$0 sps:$4 sm:$0x11]   ;;  %v557_v28 = vshll.u32 %v3734_v44, 16  ;;  %v553_v12 = vsel %vm469_vm1, %v548_v22, %v552_v60 }
  0xcb   : > { %1599 = vrot.lane.b32.xlu0 %v1458_v9, %s2986_s10  ;;  %v649_v9 = vsel %vm469_vm1, %v644_v0, %v648_v57  ;;  %v555_v39 = vshrl.u32 %v3734_v44, 16  ;;  %v562_v4 = vshll.u32 %v2873_v47, 16  ;;  %v1664_v42 = vsel %vm694_vm0, %v1662_v63, %v1663_v3  ;;  %v2879_v0 = vld [vmem:[%s3070_s30 + $0x5c] ss:$0 sps:$4 sm:$0x11]  }
  0xcc   : > { %v1690_v33 = vpop.permute.xlu1 %1689  ;;  %v559_v11 = vrot.slane %v557_v28, 1  ;;  %v656_v8 = vor.u32 %v655_v32, %v651_v38  ;;  %v660_v14 = vrot.slane %v658_v7, 1  ;;  %v1640_v27 = vsel %vm694_vm0, %v1638_v26, %v1639_v21  ;;  %v2881_v21 = vld [vmem:[%s3070_s30 + $0x68] ss:$0 sps:$4 sm:$0x11]  }
  0xcd   : > { %v1954_v41 = vsel %vm1934_vm9, %v1921_v56, %v1690_v33  ;;  %v1674_v40 = vpop.permute.xlu0 %1673  ;;  %v564_v20 = vrot.slane %v562_v4, 1  ;;  %v738_v19 = vrot.slane %v3683_v50, 1  ;;  %v713_v1 = vrot.slane %v3669_v61, 1 }
  0xce   : > { %v1978_v48 = vsel %vm1967_vm10, %v1954_v41, 0  ;;  %v1938_v36 = vsel %vm1934_vm9, %v1905_v46, %v1674_v40  ;;  %1617 = vrot.lane.b32.xlu1 %v1566_v10, %s2986_s10  ;;  %v560_v55 = vor.u32 %v559_v11, %v555_v39  ;;  %v661_v13 = vsel %vm469_vm1, %v656_v8, %v660_v14  ;;  %v3812_v41 = vld [vmem:[%s3070_s30 + $0xc0] sm:$0xff]   ;;  %v2878_v40 = vld [vmem:[%s3070_s30 + $0xbc] ss:$0 sps:$4 sm:$0x11]  }
  0xcf   : > { %v1970_v45 = vsel %vm1967_vm10, %v1938_v36, 0  ;;  %1601 = vrot.lane.b32.xlu0 %v1470_v59, %s2986_s10  ;;  %2705 = vmatmul.mubr.msk.bf16.vlgmr.msra.gmra.mxu1 %vm2016_vm11, %v1978_v48  ;;  %v737_v10 = vrot.slane %v3659_v51, 1  ;;  %v740_v50 = vrot.slane %v3726_v43, 1  ;;  %v741_v59 = vrot.slane %v2871_v53, 1 }
  0xd0   : > { %2689 = vmatmul.mubr.msk.bf16.vlgmr.msra.gmra.mxu0 %vm2016_vm11, %v1970_v45  ;;  %v3751_v54 = vpop.permute.xlu1 %684  ;;  %v565_v29 = vsel %vm469_vm1, %v560_v55, %v564_v20  ;;  %v715_v18 = vsel %vm694_vm0, %v713_v1, %v714_v31  ;;  %v716_v56 = vrot.slane %v3734_v44, 1  ;;  %v717_v33 = vrot.slane %v2873_v47, 1  ;;  %v3820_v45 = vld [vmem:[%s3070_s30 + $0x60] sm:$0xff]   ;;  %v2880_v47 = vld [vmem:[%s3070_s30 + $0xc8] ss:$0 sps:$4 sm:$0x11]  }
  0xd1   : > { %v3756_v62 = vpop.permute.xlu0 %668  ;;  %v739_v34 = vsel %vm694_vm0, %v737_v10, %v738_v19  ;;  %v742_v46 = vsel %vm694_vm0, %v740_v50, %v741_v59  ;;  %v1106_v48 = vshll.u32 %v3797_v37, 16  ;;  %v1010_v57 = vshll.u32 %v3804_v30, 16 }
  0xd2   : > { %1695 = vrot.lane.b32.xlu1 %v1661_v25, %s2987_s11  ;;  %v718_v25 = vsel %vm694_vm0, %v716_v56, %v717_v33  ;;  %v1104_v49 = vshrl.u32 %v3797_v37, 16  ;;  %v1111_v60 = vshll.u32 %v2878_v40, 16  ;;  %v1118_v28 = vshll.u32 %v3812_v41, 16 }
  0xd3   : > { %1679 = vrot.lane.b32.xlu0 %v1637_v6, %s2987_s11  ;;  %v1008_v6 = vshrl.u32 %v3804_v30, 16  ;;  %v1108_v22 = vrot.slane %v1106_v48, 1  ;;  %v1012_v3 = vrot.slane %v1010_v57, 1  ;;  %v1015_v26 = vshll.u32 %v2879_v0, 16 }
  0xd4   : > { %v3766_v2 = vpop.permute.xlu1 %763  ;;  %v1116_v32 = vshrl.u32 %v3812_v41, 16  ;;  %v1020_v7 = vshrl.u32 %v3820_v45, 16  ;;  %v1113_v39 = vrot.slane %v1111_v60, 1  ;;  %v1120_v11 = vrot.slane %v1118_v28, 1 }
  0xd5   : > { %v3770_v17 = vpop.permute.xlu0 %747  ;;  %v1123_v4 = vshll.u32 %v2880_v47, 16  ;;  %v1013_v8 = vor.u32 %v1012_v3, %v1008_v6  ;;  %v1017_v14 = vrot.slane %v1015_v26, 1  ;;  %v1027_v55 = vshll.u32 %v2881_v21, 16  ;;  %v3879_v60 = vld [vmem:[%s3070_s30 + $0xc8] ss:$0 sps:$4 sm:$0x11]  }
  0xd6   : > { %690 = vrot.lane.b32.xlu1 %v649_v9, %s2982_s6  ;;  %v1022_v9 = vshll.u32 %v3820_v45, 16  ;;  %v1121_v10 = vor.u32 %v1120_v11, %v1116_v32  ;;  %v1202_v56 = vrot.slane %v2878_v40, 1  ;;  %v1177_v48 = vrot.slane %v3804_v30, 1 }
  0xd7   : > { %674 = vrot.lane.b32.xlu0 %v553_v12, %s2982_s6  ;;  %v1109_v12 = vor.u32 %v1108_v22, %v1104_v49  ;;  %v1125_v19 = vrot.slane %v1123_v4, 1  ;;  %v1018_v1 = vsel %vm469_vm1, %v1013_v8, %v1017_v14  ;;  %v3869_v49 = vld [vmem:[%s3070_s30 + $0xc0] sm:$0xff]   ;;  %v1204_v40 = vrot.slane %v3812_v41, 1 }
  0xd8   : > { %v3775_v15 = vpop.permute.xlu1 %765  ;;  %v1205_v6 = vrot.slane %v2880_v47, 1  ;;  %v3876_v22 = vld [vmem:[%s3070_s30 + $0x60] sm:$0xff]   ;;  %v1180_v28 = vrot.slane %v3820_v45, 1  ;;  %v1181_v3 = vrot.slane %v2881_v21, 1  ;;  %v1568_v4 = vshrl.u32 %v3869_v49, 16 }
  0xd9   : > { %v3778_v24 = vpop.permute.xlu0 %749  ;;  %v1126_v59 = vsel %vm469_vm1, %v1121_v10, %v1125_v19  ;;  %v3893_v47 = vld [vmem:[%s3070_s30 + $0x68] ss:$0 sps:$4 sm:$0x11]   ;;  %v1474_v21 = vshll.u32 %v3876_v22, 16 }
  0xda   : > { %1697 = vrot.lane.b32.xlu1 %v1664_v42, %s2987_s11  ;;  %v1206_v32 = vsel %vm694_vm0, %v1204_v40, %v1205_v6  ;;  %v1479_v10 = vshll.u32 %v3893_v47, 16  ;;  %v3912_v19 = vld [vmem:[%s3070_s30 + $0xd4] ss:$0 sps:$4 sm:$0x11]  }
  0xdb   : > { %1681 = vrot.lane.b32.xlu0 %v1640_v27, %s2987_s11  ;;  %v1024_v27 = vrot.slane %v1022_v9, 1  ;;  %v3888_v9 = vld [vmem:[%s3070_s30 + $0xcc] sm:$0xff]  }
  0xdc   : > { %v3785_v58 = vpop.permute.xlu1 %875  ;;  %v1582_v14 = vshll.u32 %v3888_v9, 16 }
  0xdd   : > { %v3790_v52 = vpop.permute.xlu0 %859  ;;  %v1025_v31 = vor.u32 %v1024_v27, %v1020_v7  ;;  %v2894_v27 = vld [vmem:[%s3070_s30 + $0x78] sm:$0xff]  }
  0xde   : > { %692 = vrot.lane.b32.xlu1 %v661_v13, %s2982_s6  ;;  %v1114_v13 = vsel %vm469_vm1, %v1109_v12, %v1113_v39  ;;  %v1182_v12 = vsel %vm694_vm0, %v1180_v28, %v1181_v3  ;;  %v3901_v39 = vld [vmem:[%s3070_s30 + $0x6c] sm:$0xff]   ;;  %v1481_v28 = vrot.slane %v1479_v10, 1  ;;  %v1587_v3 = vshll.u32 %v3912_v19, 16  ;;  %v2897_v10 = vld [vmem:[%s3070_s30 + $0x24] sm:$0xff]  }
  0xdf   : > { %676 = vrot.lane.b32.xlu0 %v565_v29, %s2982_s6 }
  0xe0   : > { %v3799_v16 = vpop.permute.xlu1 %877 }
  0xe1   : > { %v3806_v23 = vpop.permute.xlu0 %861 }
  0xe2   : > { %771 = vrot.lane.b32.xlu1 %v739_v34, %s2981_s5  ;;  %v1029_v34 = vrot.slane %v1027_v55, 1  ;;  %v1725_v55 = vsel %vm1703_vm2, %v2894_v27, %v3697_v5  ;;  %v2896_v27 = vld [vmem:[%s3070_s30 + $0x84] sm:$0xff]  }
  0xe3   : > { %755 = vrot.lane.b32.xlu0 %v715_v18, %s2981_s5  ;;  %v1201_v18 = vrot.slane %v3797_v37, 1 }
  0xe4   : > { %v3816_v36 = vpop.permute.xlu1 %1147 }
  0xe5   : > { %v3824_v53 = vpop.permute.xlu0 %1131 }
  0xe6   : > { %773 = vrot.lane.b32.xlu1 %v742_v46, %s2981_s5  ;;  %v1030_v46 = vsel %vm469_vm1, %v1025_v31, %v1029_v34  ;;  %v1758_v34 = vsel %vm1736_vm3, %v1725_v55, %v3766_v2  ;;  %v1727_v55 = vsel %vm1703_vm2, %v2896_v27, %v3751_v54 }
  0xe7   : > { %757 = vrot.lane.b32.xlu0 %v718_v25, %s2981_s5  ;;  %v1178_v25 = vrot.slane %v2879_v0, 1 }
  0xe8   : > { %v3832_v63 = vpop.permute.xlu1 %1149 }
  0xe9   : > { %v3836_v38 = vpop.permute.xlu0 %1133  ;;  %v1179_v0 = vsel %vm694_vm0, %v1177_v48, %v1178_v25  ;;  %v1580_v48 = vshrl.u32 %v3888_v9, 16  ;;  %v3928_v25 = vld [vmem:[%s3070_s30 + $0x74] ss:$0 sps:$4 sm:$0x11]  }
  0xea   : > { %883 = vrot.lane.b32.xlu1 %v3797_v37, %s2980_s4  ;;  %v1203_v37 = vsel %vm694_vm0, %v1201_v18, %v1202_v56  ;;  %v1476_v18 = vrot.slane %v1474_v21, 1  ;;  %v1791_v56 = vsel %vm1769_vm4, %v1758_v34, %v3785_v58 }
  0xeb   : > { %867 = vrot.lane.b32.xlu0 %v3804_v30, %s2980_s4 }
  0xec   : > { %v3844_v42 = vpop.permute.xlu1 %1227 }
  0xed   : > { %v3846_v20 = vpop.permute.xlu0 %1211 }
  0xee   : > { %885 = vrot.lane.b32.xlu1 %v3812_v41, %s2980_s4  ;;  %v1570_v41 = vshll.u32 %v3869_v49, 16 }
  0xef   : > { %869 = vrot.lane.b32.xlu0 %v3820_v45, %s2980_s4  ;;  %v1575_v45 = vshll.u32 %v3879_v60, 16  ;;  %s2443_s4 = sshll.u32 %s175_s28, 8 }
  0xf0   : > { %v3853_v29 = vpop.permute.xlu1 %1229  ;;  %v1572_v8 = vrot.slane %v1570_v41, 1  ;;  %v1484_v41 = vshrl.u32 %v3901_v39, 16  ;;  %s4130_s6 = scalar_lea.vmem [#allocation2], %s2443_s4 }
  0xf1   : > { %v3856_v50 = vpop.permute.xlu0 %1213 }
  0xf2   : > { %1155 = vrot.lane.b32.xlu1 %v1114_v13, %s2983_s7  ;;  %v1472_v13 = vshrl.u32 %v3876_v22, 16  ;;  %v1573_v6 = vor.u32 %v1572_v8, %v1568_v4 }
  0xf3   : > { %1139 = vrot.lane.b32.xlu0 %v1018_v1, %s2983_s7  ;;  %v2895_v1 = vld [vmem:[%s3070_s30 + $0x18] sm:$0xff]  }
  0xf4   : > { %v3862_v33 = vpop.permute.xlu1 %1339  ;;  %v1709_v31 = vsel %vm1703_vm2, %v2895_v1, %v3708_v35  ;;  %v1486_v35 = vshll.u32 %v3901_v39, 16  ;;  %v1760_v1 = vsel %vm1736_vm3, %v1727_v55, %v3775_v15 }
  0xf5   : > { %v3866_v57 = vpop.permute.xlu0 %1323  ;;  %v1742_v5 = vsel %vm1736_vm3, %v1709_v31, %v3770_v17  ;;  %v1584_v17 = vrot.slane %v1582_v14, 1 }
  0xf6   : > { %1157 = vrot.lane.b32.xlu1 %v1126_v59, %s2983_s7  ;;  %v1577_v59 = vrot.slane %v1575_v45, 1  ;;  %v1775_v2 = vsel %vm1769_vm4, %v1742_v5, %v3790_v52  ;;  %v1488_v21 = vrot.slane %v1486_v35, 1 }
  0xf7   : > { %1141 = vrot.lane.b32.xlu0 %v1030_v46, %s2983_s7  ;;  %v1808_v58 = vsel %vm1802_vm5, %v1775_v2, %v3824_v53  ;;  %v1477_v53 = vor.u32 %v1476_v18, %v1472_v13  ;;  %v1585_v14 = vor.u32 %v1584_v17, %v1580_v48  ;;  %v1589_v13 = vrot.slane %v1587_v3, 1  ;;  %s2662_s7 = sshll.u32 %s2970_s15, 12 }
  0xf8   : > { %v3881_v30 = vpop.permute.xlu1 %1341  ;;  %v1841_v52 = vsel %vm1835_vm6, %v1808_v58, %v3846_v20  ;;  %v1578_v8 = vsel %vm469_vm1, %v1573_v6, %v1577_v59  ;;  %v1793_v59 = vsel %vm1769_vm4, %v1760_v1, %v3799_v16  ;;  %v1489_v15 = vor.u32 %v1488_v21, %v1484_v41 }
  0xf9   : > { %v3885_v26 = vpop.permute.xlu0 %1325  ;;  %v1482_v54 = vsel %vm469_vm1, %v1477_v53, %v1481_v28  ;;  %v1590_v35 = vsel %vm469_vm1, %v1585_v14, %v1589_v13  ;;  %v1665_v2 = vrot.slane %v3869_v49, 1 }
  0xfa   : > { %1235 = vrot.lane.b32.xlu1 %v1203_v37, %s2984_s8  ;;  %v1824_v37 = vsel %vm1802_vm5, %v1791_v56, %v3816_v36  ;;  %v1826_v56 = vsel %vm1802_vm5, %v1793_v59, %v3832_v63  ;;  %v2899_v59 = vld [vmem:[%s3070_s30 + $0x30] sm:$0xff]  }
  0xfb   : > { %1219 = vrot.lane.b32.xlu0 %v1179_v0, %s2984_s8  ;;  %v1857_v0 = vsel %vm1835_vm6, %v1824_v37, %v3844_v42  ;;  %v1874_v42 = vsel %vm1868_vm7, %v1841_v52, %v3866_v57  ;;  %v1859_v16 = vsel %vm1835_vm6, %v1826_v56, %v3853_v29  ;;  %v1666_v37 = vrot.slane %v3879_v60, 1 }
  0xfc   : > { %v1612_v7 = vpop.permute.xlu1 %1611  ;;  %v1890_v36 = vsel %vm1868_vm7, %v1857_v0, %v3862_v33  ;;  %v1892_v63 = vsel %vm1868_vm7, %v1859_v16, %v3881_v30  ;;  %v1644_v52 = vrot.slane %v3901_v39, 1 }
  0xfd   : > { %v1596_v11 = vpop.permute.xlu0 %1595 }
  0xfe   : > { %1237 = vrot.lane.b32.xlu1 %v1206_v32, %s2984_s8  ;;  %v1923_v32 = vsel %vm1901_vm8, %v1890_v36, %v1612_v7  ;;  %v1907_v20 = vsel %vm1901_vm8, %v1874_v42, %v1596_v11  ;;  %v1711_v11 = vsel %vm1703_vm2, %v2897_v10, %v3756_v62  ;;  %v1645_v36 = vrot.slane %v3928_v25, 1 }
  0xff   : > { %1221 = vrot.lane.b32.xlu0 %v1182_v12, %s2984_s8  ;;  %v1491_v12 = vshll.u32 %v3928_v25, 16  ;;  %v1744_v34 = vsel %vm1736_vm3, %v1711_v11, %v3778_v24  ;;  %s2355_s8 = sshll.u32 %s4130_s6, 4  ;;  %s4196_s8 = int_to_ptr.vmem [resolvable:$true] %s2355_s8 }
 0x100   : > { %v3924_v46 = vpop.permute.xlu1 %1613  ;;  %v1777_v5 = vsel %vm1769_vm4, %v1744_v34, %v3806_v23  ;;  %s2902_s18 = scalar_lea.vmem %s4196_s8, 4096  ;;  %p2909_p1 = scmp.lt.s32.totalorder %s4196_s8, %s2907_s21 }
 0x101   : > { %v1598_v40 = vpop.permute.xlu0 %1597  ;;  %v1493_v18 = vrot.slane %v1491_v12, 1  ;;  %v1810_v24 = vsel %vm1802_vm5, %v1777_v5, %v3836_v38  ;;  %v1641_v38 = vrot.slane %v3876_v22, 1  ;;  %v1925_v6 = vsel %vm1901_vm8, %v1892_v63, %v3924_v46  ;;  %p2903_p12 = scmp.ne.s32.totalorder %s4196_s8, %s2902_s18  ;;  %p2910_p2 = scmp.lt.s32.totalorder %s2908_s23, %s2902_s18 }
 0x102   : > { %1347 = vrot.lane.b32.xlu1 %v3869_v49, %s2985_s9  ;;  %v1843_v23 = vsel %vm1835_vm6, %v1810_v24, %v3856_v50  ;;  %v1642_v50 = vrot.slane %v3893_v47, 1  ;;  %v1667_v46 = vsel %vm694_vm0, %v1665_v2, %v1666_v37  ;;  %v1668_v47 = vrot.slane %v3888_v9, 1 }
 0x103   : > { %1331 = vrot.lane.b32.xlu0 %v3876_v22, %s2985_s9  ;;  %v1876_v29 = vsel %vm1868_vm7, %v1843_v23, %v3885_v26  ;;  %v1494_v49 = vsel %vm469_vm1, %v1489_v15, %v1493_v18  ;;  %p2904_p13 = pnand %p2903_p12, %p3050_p4  ;;  %p2911_p3 = por %p2910_p2, %p2909_p1 }
 0x104   : > { %v1692_v45 = vpop.permute.xlu1 %1691  ;;  %v1909_v58 = vsel %vm1901_vm8, %v1876_v29, %v1598_v40  ;;  %v1669_v40 = vrot.slane %v3912_v19, 1  ;;  %v1643_v3 = vsel %vm694_vm0, %v1641_v38, %v1642_v50  ;;  %v2900_v50 = vld [vmem:[%s3070_s30 + $0x9c] sm:$0xff]  }
 0x105   : > { %v1956_v33 = vsel %vm1934_vm9, %v1923_v32, %v1692_v45  ;;  %v1676_v4 = vpop.permute.xlu0 %1675  ;;  %p2905_p0 = pneg %p2904_p13 }
 0x106   : > { %v1979_v57 = vsel %vm1967_vm10, %v1956_v33, 0  ;;  %v1940_v7 = vsel %vm1934_vm9, %v1907_v20, %v1676_v4  ;;  %1349 = vrot.lane.b32.xlu1 %v3888_v9, %s2985_s9  ;;  %v1670_v41 = vsel %vm694_vm0, %v1668_v47, %v1669_v40  ;;  %v1646_v9 = vsel %vm694_vm0, %v1644_v52, %v1645_v36 }
 0x107   : > { %v1971_v31 = vsel %vm1967_vm10, %v1940_v7, 0  ;;  %1333 = vrot.lane.b32.xlu0 %v3901_v39, %s2985_s9  ;;  %2708 = vmatprep.mubr.msk.bf16.mxu1 %vm2016_vm11, %v1979_v57  ;;  %p2912_p5 = pnand %p2911_p3, %p2905_p0 }
 0x108   : > { %2692 = vmatprep.mubr.msk.bf16.mxu0 %vm2016_vm11, %v1971_v31  ;;  %v3978_v62 = vpop.permute.xlu1 %686 }
 0x109   : > { %v3984_v48 = vpop.permute.xlu0 %670 }
 0x10a   : > { %1619 = vrot.lane.b32.xlu1 %v1578_v8, %s2986_s10  ;;  %v1713_v15 = vsel %vm1703_vm2, %v2899_v59, %v3984_v48 }
 0x10b   : > { %1603 = vrot.lane.b32.xlu0 %v1482_v54, %s2986_s10  ;;  %v2898_v54 = vld [vmem:[%s3070_s30 + $0x90] sm:$0xff]  }
 0x10c   : > { %v1694_v17 = vpop.permute.xlu1 %1693  ;;  %v1729_v34 = vsel %vm1703_vm2, %v2898_v54, %v3978_v62 }
 0x10d   : > { %v1958_v30 = vsel %vm1934_vm9, %v1925_v6, %v1694_v17  ;;  %v1678_v0 = vpop.permute.xlu0 %1677 }
 0x10e   : > { %v1980_v60 = vsel %vm1967_vm10, %v1958_v30, 0  ;;  %v1942_v22 = vsel %vm1934_vm9, %v1909_v58, %v1678_v0  ;;  %1621 = vrot.lane.b32.xlu1 %v1590_v35, %s2986_s10 }
 0x10f   : > { %v1972_v26 = vsel %vm1967_vm10, %v1942_v22, 0  ;;  %1605 = vrot.lane.b32.xlu0 %v1494_v49, %s2986_s10  ;;  %2709 = vmatmul.mubr.msk.bf16.gmra.mxu1 %vm2016_vm11, %v1980_v60  ;;  %v2901_v60 = vld [vmem:[%s3070_s30 + $0x3c] sm:$0xff]   ;;  %s4193_s10 = scalar_lea.hbm %s4251_s3, %s2662_s7 }
 0x110   : > { %2693 = vmatmul.mubr.msk.bf16.gmra.mxu0 %vm2016_vm11, %v1972_v26  ;;  %v689_v28 = vpop.permute.xlu1 %688 }
 0x111   : > { %v673_v53 = vpop.permute.xlu0 %672  ;;  %v1731_v58 = vsel %vm1703_vm2, %v2900_v50, %v689_v28 }
 0x112   : > { %1699 = vrot.lane.b32.xlu1 %v1667_v46, %s2987_s11  ;;  %v1715_v22 = vsel %vm1703_vm2, %v2901_v60, %v673_v53 }
 0x113   : > { %1683 = vrot.lane.b32.xlu0 %v1643_v3, %s2987_s11 }
 0x114   : > { %v768_v42 = vpop.permute.xlu1 %767 }
 0x115   : > { %v752_v19 = vpop.permute.xlu0 %751  ;;  %v1762_v18 = vsel %vm1736_vm3, %v1729_v34, %v768_v42 }
 0x116   : > { %1701 = vrot.lane.b32.xlu1 %v1670_v41, %s2987_s11  ;;  %v1746_v5 = vsel %vm1736_vm3, %v1713_v15, %v752_v19 }
 0x117   : > { %1685 = vrot.lane.b32.xlu0 %v1646_v9, %s2987_s11  ;;  %s4202_s11 = scalar_lea.sflag [#allocation3], %s175_s28 }
 0x118   : > { %v770_v32 = vpop.permute.xlu1 %769 }
 0x119   : > { %v754_v45 = vpop.permute.xlu0 %753  ;;  %v1764_v26 = vsel %vm1736_vm3, %v1731_v58, %v770_v32 }
 0x11a   : > { %v1748_v47 = vsel %vm1736_vm3, %v1715_v22, %v754_v45 }
 0x11c   : > { %v880_v39 = vpop.permute.xlu1 %879 }
 0x11d   : > { %v864_v21 = vpop.permute.xlu0 %863  ;;  %v1795_v56 = vsel %vm1769_vm4, %v1762_v18, %v880_v39 }
 0x11e   : > { %v1779_v16 = vsel %vm1769_vm4, %v1746_v5, %v864_v21 }
 0x120   : > { %v882_v25 = vpop.permute.xlu1 %881 }
 0x121   : > { %v866_v12 = vpop.permute.xlu0 %865  ;;  %v1797_v40 = vsel %vm1769_vm4, %v1764_v26, %v882_v25 }
 0x122   : > { %v1781_v3 = vsel %vm1769_vm4, %v1748_v47, %v866_v12 }
 0x124   : > { %v1152_v20 = vpop.permute.xlu1 %1151 }
 0x125   : > { %v1136_v33 = vpop.permute.xlu0 %1135  ;;  %v1828_v35 = vsel %vm1802_vm5, %v1795_v56, %v1152_v20 }
 0x126   : > { %v1812_v62 = vsel %vm1802_vm5, %v1779_v16, %v1136_v33 }
 0x128   : > { %v1154_v4 = vpop.permute.xlu1 %1153 }
 0x129   : > { %v1138_v8 = vpop.permute.xlu0 %1137  ;;  %v1830_v52 = vsel %vm1802_vm5, %v1797_v40, %v1154_v4 }
 0x12a   : > { %v1814_v53 = vsel %vm1802_vm5, %v1781_v3, %v1138_v8 }
 0x12c   : > { %v1232_v14 = vpop.permute.xlu1 %1231 }
 0x12d   : > { %v1216_v27 = vpop.permute.xlu0 %1215  ;;  %v1861_v23 = vsel %vm1835_vm6, %v1828_v35, %v1232_v14 }
 0x12e   : > { %v1845_v48 = vsel %vm1835_vm6, %v1812_v62, %v1216_v27 }
 0x130   : > { %v1234_v55 = vpop.permute.xlu1 %1233 }
 0x131   : > { %v1218_v57 = vpop.permute.xlu0 %1217  ;;  %v1863_v41 = vsel %vm1835_vm6, %v1830_v52, %v1234_v55 }
 0x132   : > { %v1847_v42 = vsel %vm1835_vm6, %v1814_v53, %v1218_v57 }
 0x134   : > { %v1344_v7 = vpop.permute.xlu1 %1343 }
 0x135   : > { %v1328_v13 = vpop.permute.xlu0 %1327  ;;  %v1894_v63 = vsel %vm1868_vm7, %v1861_v23, %v1344_v7 }
 0x136   : > { %v1878_v37 = vsel %vm1868_vm7, %v1845_v48, %v1328_v13 }
 0x138   : > { %v1346_v10 = vpop.permute.xlu1 %1345 }
 0x139   : > { %v1330_v11 = vpop.permute.xlu0 %1329  ;;  %v1896_v9 = vsel %vm1868_vm7, %v1863_v41, %v1346_v10 }
 0x13a   : > { %v1880_v19 = vsel %vm1868_vm7, %v1847_v42, %v1330_v11 }
 0x13c   : > { %v1616_v1 = vpop.permute.xlu1 %1615 }
 0x13d   : > { %v1600_v31 = vpop.permute.xlu0 %1599  ;;  %v1927_v38 = vsel %vm1901_vm8, %v1894_v63, %v1616_v1 }
 0x13e   : > { %v1911_v6 = vsel %vm1901_vm8, %v1878_v37, %v1600_v31 }
 0x140   : > { %v1618_v24 = vpop.permute.xlu1 %1617 }
 0x141   : > { %v1602_v2 = vpop.permute.xlu0 %1601  ;;  %v1929_v32 = vsel %vm1901_vm8, %v1896_v9, %v1618_v24 }
 0x142   : > { %v1913_v39 = vsel %vm1901_vm8, %v1880_v19, %v1602_v2 }
 0x144   : > { %v1696_v29 = vpop.permute.xlu1 %1695 }
 0x145   : > { %v1960_v17 = vsel %vm1934_vm9, %v1927_v38, %v1696_v29  ;;  %v1680_v49 = vpop.permute.xlu0 %1679 }
 0x146   : > { %v1981_v30 = vsel %vm1967_vm10, %v1960_v17, 0  ;;  %v1944_v0 = vsel %vm1934_vm9, %v1911_v6, %v1680_v49 }
 0x147   : > { %v1973_v46 = vsel %vm1967_vm10, %v1944_v0, 0  ;;  %2712 = vmatprep.mubr.msk.bf16.mxu1 %vm2016_vm11, %v1981_v30 }
 0x148   : > { %2696 = vmatprep.mubr.msk.bf16.mxu0 %vm2016_vm11, %v1973_v46  ;;  %v691_v28 = vpop.permute.xlu1 %690 }
 0x149   : > { %v675_v36 = vpop.permute.xlu0 %674  ;;  %v1733_v23 = vsel %vm1703_vm2, %v3659_v51, %v691_v28 }
 0x14a   : > { %v1717_v48 = vsel %vm1703_vm2, %v3669_v61, %v675_v36 }
 0x14c   : > { %v1698_v45 = vpop.permute.xlu1 %1697 }
 0x14d   : > { %v1962_v21 = vsel %vm1934_vm9, %v1929_v32, %v1698_v45  ;;  %v1682_v25 = vpop.permute.xlu0 %1681 }
 0x14e   : > { %v1982_v12 = vsel %vm1967_vm10, %v1962_v21, 0  ;;  %v1946_v20 = vsel %vm1934_vm9, %v1913_v39, %v1682_v25 }
 0x14f   : > { %v1974_v33 = vsel %vm1967_vm10, %v1946_v20, 0  ;;  %2713 = vmatmul.mubr.msk.bf16.gmra.mxu1 %vm2016_vm11, %v1982_v12 }
 0x150   : > { %2697 = vmatmul.mubr.msk.bf16.gmra.mxu0 %vm2016_vm11, %v1974_v33  ;;  %v693_v4 = vpop.permute.xlu1 %692 }
 0x151   : > { %v677_v8 = vpop.permute.xlu0 %676  ;;  %v1735_v50 = vsel %vm1703_vm2, %v3726_v43, %v693_v4 }
 0x152   : > { %v1719_v61 = vsel %vm1703_vm2, %v3734_v44, %v677_v8 }
 0x154   : > { %v772_v14 = vpop.permute.xlu1 %771 }
 0x155   : > { %v756_v27 = vpop.permute.xlu0 %755  ;;  %v1766_v63 = vsel %vm1736_vm3, %v1733_v23, %v772_v14  ;;  %v4121_v14 = vld [vmem:[%s4250_s2] ss:$0 sm:$0xff] }
 0x156   : > { %v1750_v37 = vsel %vm1736_vm3, %v1717_v48, %v756_v27 }
 0x158   : > { %v774_v55 = vpop.permute.xlu1 %773 }
 0x159   : > { %v758_v57 = vpop.permute.xlu0 %757  ;;  %v1768_v30 = vsel %vm1736_vm3, %v1735_v50, %v774_v55 }
 0x15a   : > { %v1752_v22 = vsel %vm1736_vm3, %v1719_v61, %v758_v57 }
 0x15c   : > { %v884_v7 = vpop.permute.xlu1 %883 }
 0x15d   : > { %v868_v13 = vpop.permute.xlu0 %867  ;;  %v1799_v38 = vsel %vm1769_vm4, %v1766_v63, %v884_v7 }
 0x15e   : > { %v1783_v6 = vsel %vm1769_vm4, %v1750_v37, %v868_v13 }
 0x160   : > { %v886_v10 = vpop.permute.xlu1 %885 }
 0x161   : > { %v870_v11 = vpop.permute.xlu0 %869  ;;  %v1801_v26 = vsel %vm1769_vm4, %v1768_v30, %v886_v10 }
 0x162   : > { %v1785_v40 = vsel %vm1769_vm4, %v1752_v22, %v870_v11 }
 0x164   : > { %v1156_v1 = vpop.permute.xlu1 %1155 }
 0x165   : > { %v1140_v31 = vpop.permute.xlu0 %1139  ;;  %v1832_v17 = vsel %vm1802_vm5, %v1799_v38, %v1156_v1 }
 0x166   : > { %v1816_v51 = vsel %vm1802_vm5, %v1783_v6, %v1140_v31 }
 0x168   : > { %v1158_v54 = vpop.permute.xlu1 %1157 }
 0x169   : > { %v1142_v34 = vpop.permute.xlu0 %1141  ;;  %v1834_v28 = vsel %vm1802_vm5, %v1801_v26, %v1158_v54 }
 0x16a   : > { %v1818_v36 = vsel %vm1802_vm5, %v1785_v40, %v1142_v34 }
 0x16c   : > { %v1236_v59 = vpop.permute.xlu1 %1235 }
 0x16d   : > { %v1220_v15 = vpop.permute.xlu0 %1219  ;;  %v1865_v58 = vsel %vm1835_vm6, %v1832_v17, %v1236_v59 }
 0x16e   : > { %v1849_v0 = vsel %vm1835_vm6, %v1816_v51, %v1220_v15 }
 0x170   : > { %v1238_v18 = vpop.permute.xlu1 %1237 }
 0x171   : > { %v1222_v5 = vpop.permute.xlu0 %1221  ;;  %v1867_v53 = vsel %vm1835_vm6, %v1834_v28, %v1238_v18 }
 0x172   : > { %v1851_v9 = vsel %vm1835_vm6, %v1818_v36, %v1222_v5 }
 0x174   : > { %v1348_v56 = vpop.permute.xlu1 %1347 }
 0x175   : > { %v1332_v24 = vpop.permute.xlu0 %1331  ;;  %v1898_v60 = vsel %vm1868_vm7, %v1865_v58, %v1348_v56 }
 0x176   : > { %v1882_v46 = vsel %vm1868_vm7, %v1849_v0, %v1332_v24 }
 0x178   : > { %v1350_v16 = vpop.permute.xlu1 %1349 }
 0x179   : > { %v1334_v35 = vpop.permute.xlu0 %1333  ;;  %v1900_v19 = vsel %vm1868_vm7, %v1867_v53, %v1350_v16 }
 0x17a   : > { %v1884_v45 = vsel %vm1868_vm7, %v1851_v9, %v1334_v35 }
 0x17c   : > { %v1620_v2 = vpop.permute.xlu1 %1619 }
 0x17d   : > { %v1604_v62 = vpop.permute.xlu0 %1603  ;;  %v1931_v43 = vsel %vm1901_vm8, %v1898_v60, %v1620_v2 }
 0x17e   : > { %v1915_v44 = vsel %vm1901_vm8, %v1882_v46, %v1604_v62 }
 0x180   : > { %v1622_v29 = vpop.permute.xlu1 %1621 }
 0x181   : > { %v1606_v49 = vpop.permute.xlu0 %1605  ;;  %v1933_v39 = vsel %vm1901_vm8, %v1900_v19, %v1622_v29 }
 0x182   : > { %v1917_v25 = vsel %vm1901_vm8, %v1884_v45, %v1606_v49 }
 0x184   : > { %v1700_v47 = vpop.permute.xlu1 %1699 }
 0x185   : > { %v1964_v3 = vsel %vm1934_vm9, %v1931_v43, %v1700_v47  ;;  %v1684_v52 = vpop.permute.xlu0 %1683 }
 0x186   : > { %v1983_v41 = vsel %vm1967_vm10, %v1964_v3, 0  ;;  %v1948_v42 = vsel %vm1934_vm9, %v1915_v44, %v1684_v52 }
 0x187   : > { %v1975_v32 = vsel %vm1967_vm10, %v1948_v42, 0  ;;  %2716 = vmatprep.mubr.msk.bf16.mxu1 %vm2016_vm11, %v1983_v41 }
 0x188   : > { %2700 = vmatprep.mubr.msk.bf16.mxu0 %vm2016_vm11, %v1975_v32  ;;  %v1702_v21 = vpop.permute.xlu1 %1701 }
 0x189   : > { %v1966_v12 = vsel %vm1934_vm9, %v1933_v39, %v1702_v21  ;;  %v1686_v20 = vpop.permute.xlu0 %1685 }
 0x18a   : > { %v1984_v33 = vsel %vm1967_vm10, %v1966_v12, 0  ;;  %v1950_v4 = vsel %vm1934_vm9, %v1917_v25, %v1686_v20 }
 0x18b   : > { %v1976_v8 = vsel %vm1967_vm10, %v1950_v4, 0  ;;  %2717 = vmatmul.mubr.msk.bf16.gmra.mxu1 %vm2016_vm11, %v1984_v33 }
 0x18c   : > { %2701 = vmatmul.mubr.msk.bf16.gmra.mxu0 %vm2016_vm11, %v1976_v8 }
 0x18f   : > { %v2706_v27 = vpop.f32.mrf.mxu1 }
 0x190   : > { %v2690_v55 = vpop.f32.mrf.mxu0  ;;  %v2156_v57 = vadd.f32 %v2706_v27, %v4121_v14 }
 0x191   : > { %v2092_v7 = vadd.f32 %v2690_v55, %v4121_v14  ;;  %v2147_v13 = vpop.f32.mrf.mxu1 }
 0x192   : > { %vm2228_vm12 = vcmp.gt.f32.partialorder %v2156_v57, 0.0  ;;  %v2260_v10 = vmul.f32 0.1, %v2156_v57  ;;  %v2083_v11 = vpop.f32.mrf.mxu0  ;;  %v2148_v1 = vadd.f32 %v4121_v14, %v2147_v13 }
 0x193   : > { %vm2212_vm13 = vcmp.gt.f32.partialorder %v2092_v7, 0.0  ;;  %v2244_v31 = vmul.f32 0.1, %v2092_v7  ;;  %v2084_v54 = vadd.f32 %v4121_v14, %v2083_v11  ;;  %v2707_v34 = vpop.f32.mrf.mxu1 }
 0x194   : > { %v2292_v59 = vsel %vm2228_vm12, %v2156_v57, %v2260_v10  ;;  %vm2226_vm14 = vcmp.gt.f32.partialorder %v2148_v1, 0.0  ;;  %v2258_v15 = vmul.f32 0.1, %v2148_v1  ;;  %v2691_v18 = vpop.f32.mrf.mxu0  ;;  %v2159_v5 = vadd.f32 %v2707_v34, %v4121_v14 }
 0x195   : > { %v2276_v56 = vsel %vm2212_vm13, %v2092_v7, %v2244_v31  ;;  %2324 = vst [vmem:[%s4130_s6 + $0x90] sm:$0xff] %v2292_v59  ;;  %vm2210_vm15 = vcmp.gt.f32.partialorder %v2084_v54, 0.0  ;;  %v2242_v24 = vmul.f32 0.1, %v2084_v54  ;;  %v2095_v16 = vadd.f32 %v2691_v18, %v4121_v14  ;;  %v2150_v35 = vpop.f32.mrf.mxu1 }
 0x196   : > { %2308 = vst [vmem:[%s4130_s6 + $0x10] sm:$0xff] %v2276_v56  ;;  %v2290_v2 = vsel %vm2226_vm14, %v2148_v1, %v2258_v15  ;;  %vm2229_vm0 = vcmp.gt.f32.partialorder %v2159_v5, 0.0  ;;  %v2261_v62 = vmul.f32 0.1, %v2159_v5  ;;  %v2086_v23 = vpop.f32.mrf.mxu0  ;;  %v2151_v48 = vadd.f32 %v4121_v14, %v2150_v35 }
 0x197   : > { %v2274_v63 = vsel %vm2210_vm15, %v2084_v54, %v2242_v24  ;;  %2322 = vst [vmem:[%s4130_s6 + $0x80] sm:$0xff] %v2290_v2  ;;  %vm2213_vm1 = vcmp.gt.f32.partialorder %v2095_v16, 0.0  ;;  %v2245_v37 = vmul.f32 0.1, %v2095_v16  ;;  %v2087_v38 = vadd.f32 %v4121_v14, %v2086_v23 }
 0x198   : > { %2306 = vst [vmem:[%s4130_s6] sm:$0xff] %v2274_v63  ;;  %v2293_v29 = vsel %vm2229_vm0, %v2159_v5, %v2261_v62  ;;  %vm2227_vm2 = vcmp.gt.f32.partialorder %v2151_v48, 0.0  ;;  %v2259_v6 = vmul.f32 0.1, %v2151_v48 }
 0x199   : > { %v2277_v17 = vsel %vm2213_vm1, %v2095_v16, %v2245_v37  ;;  %2325 = vst [vmem:[%s4130_s6 + $0x98] sm:$0xff] %v2293_v29  ;;  %vm2211_vm3 = vcmp.gt.f32.partialorder %v2087_v38, 0.0  ;;  %v2243_v49 = vmul.f32 0.1, %v2087_v38 }
 0x19a   : > { %2309 = vst [vmem:[%s4130_s6 + $0x18] sm:$0xff] %v2277_v17  ;;  %v2291_v50 = vsel %vm2227_vm2, %v2151_v48, %v2259_v6 }
 0x19b   : > { %v2275_v51 = vsel %vm2211_vm3, %v2087_v38, %v2243_v49  ;;  %2323 = vst [vmem:[%s4130_s6 + $0x88] sm:$0xff] %v2291_v50 }
 0x19c   : > { %2307 = vst [vmem:[%s4130_s6 + $0x8] sm:$0xff] %v2275_v51 }
 0x1cf   : > { %v2710_v58 = vpop.f32.mrf.mxu1 }
 0x1d0   : > { %v2694_v61 = vpop.f32.mrf.mxu0  ;;  %v2172_v30 = vadd.f32 %v2710_v58, %v4121_v14 }
 0x1d1   : > { %v2108_v0 = vadd.f32 %v2694_v61, %v4121_v14  ;;  %v2163_v60 = vpop.f32.mrf.mxu1 }
 0x1d2   : > { %vm2232_vm4 = vcmp.gt.f32.partialorder %v2172_v30, 0.0  ;;  %v2264_v22 = vmul.f32 0.1, %v2172_v30  ;;  %v2099_v26 = vpop.f32.mrf.mxu0  ;;  %v2164_v46 = vadd.f32 %v4121_v14, %v2163_v60 }
 0x1d3   : > { %vm2216_vm5 = vcmp.gt.f32.partialorder %v2108_v0, 0.0  ;;  %v2248_v43 = vmul.f32 0.1, %v2108_v0  ;;  %v2100_v47 = vadd.f32 %v4121_v14, %v2099_v26  ;;  %v2711_v40 = vpop.f32.mrf.mxu1 }
 0x1d4   : > { %v2296_v28 = vsel %vm2232_vm4, %v2172_v30, %v2264_v22  ;;  %vm2230_vm6 = vcmp.gt.f32.partialorder %v2164_v46, 0.0  ;;  %v2262_v44 = vmul.f32 0.1, %v2164_v46  ;;  %v2695_v3 = vpop.f32.mrf.mxu0  ;;  %v2175_v52 = vadd.f32 %v2711_v40, %v4121_v14 }
 0x1d5   : > { %v2280_v36 = vsel %vm2216_vm5, %v2108_v0, %v2248_v43  ;;  %2328 = vst [vmem:[%s4130_s6 + $0xb0] sm:$0xff] %v2296_v28  ;;  %vm2214_vm7 = vcmp.gt.f32.partialorder %v2100_v47, 0.0  ;;  %v2246_v53 = vmul.f32 0.1, %v2100_v47  ;;  %v2111_v41 = vadd.f32 %v2695_v3, %v4121_v14  ;;  %v2166_v42 = vpop.f32.mrf.mxu1 }
 0x1d6   : > { %2312 = vst [vmem:[%s4130_s6 + $0x30] sm:$0xff] %v2280_v36  ;;  %v2294_v9 = vsel %vm2230_vm6, %v2164_v46, %v2262_v44  ;;  %vm2233_vm8 = vcmp.gt.f32.partialorder %v2175_v52, 0.0  ;;  %v2265_v19 = vmul.f32 0.1, %v2175_v52  ;;  %v2102_v32 = vpop.f32.mrf.mxu0  ;;  %v2167_v45 = vadd.f32 %v4121_v14, %v2166_v42 }
 0x1d7   : > { %v2278_v39 = vsel %vm2214_vm7, %v2100_v47, %v2246_v53  ;;  %2326 = vst [vmem:[%s4130_s6 + $0xa0] sm:$0xff] %v2294_v9  ;;  %vm2217_vm9 = vcmp.gt.f32.partialorder %v2111_v41, 0.0  ;;  %v2249_v21 = vmul.f32 0.1, %v2111_v41  ;;  %v2103_v25 = vadd.f32 %v4121_v14, %v2102_v32 }
 0x1d8   : > { %2310 = vst [vmem:[%s4130_s6 + $0x20] sm:$0xff] %v2278_v39  ;;  %v2297_v12 = vsel %vm2233_vm8, %v2175_v52, %v2265_v19  ;;  %vm2231_vm10 = vcmp.gt.f32.partialorder %v2167_v45, 0.0  ;;  %v2263_v20 = vmul.f32 0.1, %v2167_v45 }
 0x1d9   : > { %v2281_v33 = vsel %vm2217_vm9, %v2111_v41, %v2249_v21  ;;  %2329 = vst [vmem:[%s4130_s6 + $0xb8] sm:$0xff] %v2297_v12  ;;  %vm2215_vm11 = vcmp.gt.f32.partialorder %v2103_v25, 0.0  ;;  %v2247_v4 = vmul.f32 0.1, %v2103_v25 }
 0x1da   : > { %2313 = vst [vmem:[%s4130_s6 + $0x38] sm:$0xff] %v2281_v33  ;;  %v2295_v8 = vsel %vm2231_vm10, %v2167_v45, %v2263_v20 }
 0x1db   : > { %v2279_v27 = vsel %vm2215_vm11, %v2103_v25, %v2247_v4  ;;  %2327 = vst [vmem:[%s4130_s6 + $0xa8] sm:$0xff] %v2295_v8 }
 0x1dc   : > { %2311 = vst [vmem:[%s4130_s6 + $0x28] sm:$0xff] %v2279_v27 }
 0x20f   : > { %v2714_v55 = vpop.f32.mrf.mxu1 }
 0x210   : > { %v2698_v57 = vpop.f32.mrf.mxu0  ;;  %v2188_v7 = vadd.f32 %v2714_v55, %v4121_v14 }
 0x211   : > { %v2124_v13 = vadd.f32 %v2698_v57, %v4121_v14  ;;  %v2179_v10 = vpop.f32.mrf.mxu1 }
 0x212   : > { %vm2236_vm12 = vcmp.gt.f32.partialorder %v2188_v7, 0.0  ;;  %v2268_v11 = vmul.f32 0.1, %v2188_v7  ;;  %v2115_v1 = vpop.f32.mrf.mxu0  ;;  %v2180_v31 = vadd.f32 %v4121_v14, %v2179_v10 }
 0x213   : > { %vm2220_vm13 = vcmp.gt.f32.partialorder %v2124_v13, 0.0  ;;  %v2252_v54 = vmul.f32 0.1, %v2124_v13  ;;  %v2116_v34 = vadd.f32 %v4121_v14, %v2115_v1  ;;  %v2715_v59 = vpop.f32.mrf.mxu1 }
 0x214   : > { %v2300_v15 = vsel %vm2236_vm12, %v2188_v7, %v2268_v11  ;;  %vm2234_vm14 = vcmp.gt.f32.partialorder %v2180_v31, 0.0  ;;  %v2266_v18 = vmul.f32 0.1, %v2180_v31  ;;  %v2699_v5 = vpop.f32.mrf.mxu0  ;;  %v2191_v56 = vadd.f32 %v2715_v59, %v4121_v14 }
 0x215   : > { %v2284_v24 = vsel %vm2220_vm13, %v2124_v13, %v2252_v54  ;;  %2332 = vst [vmem:[%s4130_s6 + $0xd0] sm:$0xff] %v2300_v15  ;;  %vm2218_vm15 = vcmp.gt.f32.partialorder %v2116_v34, 0.0  ;;  %v2250_v16 = vmul.f32 0.1, %v2116_v34  ;;  %v2127_v35 = vadd.f32 %v2699_v5, %v4121_v14  ;;  %v2182_v2 = vpop.f32.mrf.mxu1 }
 0x216   : > { %2316 = vst [vmem:[%s4130_s6 + $0x50] sm:$0xff] %v2284_v24  ;;  %v2298_v62 = vsel %vm2234_vm14, %v2180_v31, %v2266_v18  ;;  %vm2237_vm0 = vcmp.gt.f32.partialorder %v2191_v56, 0.0  ;;  %v2269_v23 = vmul.f32 0.1, %v2191_v56  ;;  %v2118_v48 = vpop.f32.mrf.mxu0  ;;  %v2183_v63 = vadd.f32 %v4121_v14, %v2182_v2 }
 0x217   : > { %v2282_v37 = vsel %vm2218_vm15, %v2116_v34, %v2250_v16  ;;  %2330 = vst [vmem:[%s4130_s6 + $0xc0] sm:$0xff] %v2298_v62  ;;  %vm2221_vm1 = vcmp.gt.f32.partialorder %v2127_v35, 0.0  ;;  %v2253_v38 = vmul.f32 0.1, %v2127_v35  ;;  %v2119_v29 = vadd.f32 %v4121_v14, %v2118_v48 }
 0x218   : > { %2314 = vst [vmem:[%s4130_s6 + $0x40] sm:$0xff] %v2282_v37  ;;  %v2301_v6 = vsel %vm2237_vm0, %v2191_v56, %v2269_v23  ;;  %vm2235_vm2 = vcmp.gt.f32.partialorder %v2183_v63, 0.0  ;;  %v2267_v17 = vmul.f32 0.1, %v2183_v63 }
 0x219   : > { %v2285_v49 = vsel %vm2221_vm1, %v2127_v35, %v2253_v38  ;;  %2333 = vst [vmem:[%s4130_s6 + $0xd8] sm:$0xff] %v2301_v6  ;;  %vm2219_vm3 = vcmp.gt.f32.partialorder %v2119_v29, 0.0  ;;  %v2251_v50 = vmul.f32 0.1, %v2119_v29 }
 0x21a   : > { %2317 = vst [vmem:[%s4130_s6 + $0x58] sm:$0xff] %v2285_v49  ;;  %v2299_v51 = vsel %vm2235_vm2, %v2183_v63, %v2267_v17 }
 0x21b   : > { %v2283_v58 = vsel %vm2219_vm3, %v2119_v29, %v2251_v50  ;;  %2331 = vst [vmem:[%s4130_s6 + $0xc8] sm:$0xff] %v2299_v51 }
 0x21c   : > { %2315 = vst [vmem:[%s4130_s6 + $0x48] sm:$0xff] %v2283_v58 }
 0x24b   : > { %v2718_v61 = vpop.f32.mrf.mxu1 }
 0x24c   : > { %v2702_v30 = vpop.f32.mrf.mxu0  ;;  %v2204_v0 = vadd.f32 %v2718_v61, %v4121_v14 }
 0x24d   : > { %v2140_v60 = vadd.f32 %v2702_v30, %v4121_v14  ;;  %v2195_v22 = vpop.f32.mrf.mxu1 }
 0x24e   : > { %vm2240_vm4 = vcmp.gt.f32.partialorder %v2204_v0, 0.0  ;;  %v2272_v26 = vmul.f32 0.1, %v2204_v0  ;;  %v2131_v46 = vpop.f32.mrf.mxu0  ;;  %v2196_v43 = vadd.f32 %v4121_v14, %v2195_v22 }
 0x24f   : > { %vm2224_vm5 = vcmp.gt.f32.partialorder %v2140_v60, 0.0  ;;  %v2256_v47 = vmul.f32 0.1, %v2140_v60  ;;  %v2132_v40 = vadd.f32 %v4121_v14, %v2131_v46  ;;  %v2719_v28 = vpop.f32.mrf.mxu1 }
 0x250   : > { %v2304_v44 = vsel %vm2240_vm4, %v2204_v0, %v2272_v26  ;;  %vm2238_vm6 = vcmp.gt.f32.partialorder %v2196_v43, 0.0  ;;  %v2270_v3 = vmul.f32 0.1, %v2196_v43  ;;  %v2703_v52 = vpop.f32.mrf.mxu0  ;;  %v2207_v36 = vadd.f32 %v2719_v28, %v4121_v14 }
 0x251   : > { %v2288_v53 = vsel %vm2224_vm5, %v2140_v60, %v2256_v47  ;;  %2336 = vst [vmem:[%s4130_s6 + $0xf0] sm:$0xff] %v2304_v44  ;;  %vm2222_vm7 = vcmp.gt.f32.partialorder %v2132_v40, 0.0  ;;  %v2254_v41 = vmul.f32 0.1, %v2132_v40  ;;  %v2143_v42 = vadd.f32 %v2703_v52, %v4121_v14  ;;  %v2198_v9 = vpop.f32.mrf.mxu1 }
 0x252   : > { %2320 = vst [vmem:[%s4130_s6 + $0x70] sm:$0xff] %v2288_v53  ;;  %v2302_v19 = vsel %vm2238_vm6, %v2196_v43, %v2270_v3  ;;  %vm2241_vm8 = vcmp.gt.f32.partialorder %v2207_v36, 0.0  ;;  %v2273_v32 = vmul.f32 0.1, %v2207_v36  ;;  %v2134_v45 = vpop.f32.mrf.mxu0  ;;  %v2199_v39 = vadd.f32 %v4121_v14, %v2198_v9 }
 0x253   : > { %v2286_v21 = vsel %vm2222_vm7, %v2132_v40, %v2254_v41  ;;  %2334 = vst [vmem:[%s4130_s6 + $0xe0] sm:$0xff] %v2302_v19  ;;  %vm2225_vm9 = vcmp.gt.f32.partialorder %v2143_v42, 0.0  ;;  %v2257_v25 = vmul.f32 0.1, %v2143_v42  ;;  %v2135_v12 = vadd.f32 %v4121_v14, %v2134_v45 }
 0x254   : > { %2318 = vst [vmem:[%s4130_s6 + $0x60] sm:$0xff] %v2286_v21  ;;  %v2305_v20 = vsel %vm2241_vm8, %v2207_v36, %v2273_v32  ;;  %vm2239_vm10 = vcmp.gt.f32.partialorder %v2199_v39, 0.0  ;;  %v2271_v33 = vmul.f32 0.1, %v2199_v39 }
 0x255   : > { %v2289_v4 = vsel %vm2225_vm9, %v2143_v42, %v2257_v25  ;;  %2337 = vst [vmem:[%s4130_s6 + $0xf8] sm:$0xff] %v2305_v20  ;;  %vm2223_vm11 = vcmp.gt.f32.partialorder %v2135_v12, 0.0  ;;  %v2255_v8 = vmul.f32 0.1, %v2135_v12 }
 0x256   : > { %2321 = vst [vmem:[%s4130_s6 + $0x78] sm:$0xff] %v2289_v4  ;;  %v2303_v27 = vsel %vm2239_vm10, %v2199_v39, %v2271_v33 }
 0x257   : > { %v2287_v14 = vsel %vm2223_vm11, %v2135_v12, %v2255_v8  ;;  %2335 = vst [vmem:[%s4130_s6 + $0xe8] sm:$0xff] %v2303_v27 }
 0x258   : > { %2319 = vst [vmem:[%s4130_s6 + $0x68] sm:$0xff] %v2287_v14 }
 0x259   : > { %2915 = shalt.err (!%p2912_p5)
}
 0x25a   : > { %s2916_s26 = scalar_lea.hbm %s4193_s10, 4096  ;;  %s2920_s29 = scalar_lea.hbm %s4251_s3, 8192 }
 0x25b   : > { %p2917_p6 = scmp.ne.s32.totalorder %s4193_s10, %s2916_s26  ;;  %p2921_p10 = scmp.lt.s32.totalorder %s4193_s10, %s4251_s3 }
 0x25c   : > { %p2922_p11 = scmp.lt.s32.totalorder %s2920_s29, %s2916_s26 }
 0x25d   : > { %p2918_p7 = pnand %p2917_p6, %p3050_p4 }
 0x25e   : > { %p2923_p12 = por %p2922_p11, %p2921_p10 }
 0x25f   : > { %p2919_p9 = pneg %p2918_p7 }
 0x261   : > { %p2924_p13 = pnand %p2923_p12, %p2919_p9 }
 0x263   : > { %2927 = shalt.err (!%p2924_p13)
}
 0x264   : > { %s2989_s6 = smov 128  }
 0x265   : > { %2727 = dma.vmem_to_hbm [thread:$0]  (%p3050_p4), %s4196_s8, 4096, %s4193_s10, %s4202_s11, %s2989_s6, %s2989_s6, %s2981_s5  }
 0x266 PF: > { %p2733_p0 = scmp.ge.s32.totalorder %s2978_s17, 2  ;;  %s2370_s7 = sand.u32 1, %s2958_s12  }
 0x267   : > { %s2371_s15 = scalar_lea.sflag [#allocation3], %s2370_s7 }
 0x268   : > { %p2730_p1 = pnand %p2733_p0, %p3057_p8 }
 0x26a   : > { %p2731_p2 = pneg %p2730_p1 }
 0x26c   : > { %2953 = dma.done.wait (%p2731_p2), %s2371_s15, 4096  }
 0x26d   : > { %2955 = vsyncadd (%p2731_p2), %s2371_s15, 4294963200  ;;  %s16_s17 = sadd.s32 1, %s2978_s17   ;;  %s4254_s12 = smov %s2962_s13 }
 0x26e   : > { %p13_p3 = scmp.ge.s32.totalorder %s16_s17, 4   ;;  %s4255_s13 = smov %s2966_s14 }
 0x26f   : > { %s4256_s14 = smov %s3063_s25  ;;  %s4257_s15 = smov %s2974_s16 }
 0x270   : > { %s4258_s16 = smov %s4260_s20  ;;  %15 = sbr.rel (!%p13_p3) target bundleno = 4 (0x4), region = 70 }
 0x275   :  { %2376 = vsyncpa [#allocation3], 1 }
 0x276   :  { %2378 = vsyncpa [#allocation3 + $0x1], 1 }

</bundles_post_ra>
